<compile_context>
chip_gen: v5e
topology: v5e:2x2
jax: 0.10.0
libtpu: 0.0.40
codegen_flags: <defaults>
</compile_context>

<pallas_src>
import functools

import jax
import jax.numpy as jnp
from jax.experimental import pallas as pl
from jax.experimental.pallas import tpu as pltpu

_TCO_MAX = 256  # output-channel tile width (lane-dense, fills v6e/v7x MXU)


def _round_up(x, m):
    return ((x + m - 1) // m) * m


def _conv3x3_relu_kernel(x_ref, w_ref, b_ref, o_ref, *, wc):
    """Fused 3x3 conv (padding=1, stride=1) + bias + ReLU.

    x_ref: (1, 3, (H+2)*Wc, Cin) f32  -- dw-shifted, flattened, zero-padded input
    w_ref: (9, Cin, TCo)         bf16 -- tap-major weights (t = dh*3 + dw)
    b_ref: (1, TCo)              f32
    o_ref: (1, H*Wc, TCo)        f32
    """
    hw = o_ref.shape[1]          # H * Wc output rows
    tco = o_ref.shape[2]

    acc = jnp.zeros((hw, tco), jnp.float32)
    for t in range(9):           # unrolled: 9 bf16 MXU dots, f32 accumulation
        dh, dw = divmod(t, 3)
        # Sublane-aligned 2-D slice (dh*wc is a multiple of 8): zero relayout.
        patch = x_ref[0, dw, dh * wc:dh * wc + hw, :].astype(jnp.bfloat16)
        acc = acc + jnp.dot(patch, w_ref[t],
                            preferred_element_type=jnp.float32)
    acc = acc + b_ref[...]                       # (1, TCo) broadcast
    acc = jnp.maximum(acc, 0.0)                  # ReLU
    o_ref[0] = acc.astype(o_ref.dtype)


def conv3x3_relu(x_nchw, weight, bias):
    """ReLU(Conv2d(x, weight, bias, kernel=3, stride=1, padding=1)); NCHW io."""
    n, c_in, h, w = x_nchw.shape
    c_out = weight.shape[0]

    # NCHW -> NHWC; pad with the conv halo, and round the compute width up to a
    # multiple of 8 (extra columns read zeros -> sliced away at the end).
    wc = _round_up(w, 8)
    x = jnp.transpose(x_nchw, (0, 2, 3, 1)).astype(jnp.float32)
    xp = jnp.pad(x, ((0, 0), (1, 1), (1, 1 + (wc - w)), (0, 0)))

    # Three width-shifted views, flattened so every tap is a contiguous,
    # sublane-aligned 2-D block inside the kernel.  (3x input bytes instead of
    # the previous 9x im2col through HBM.)
    xs = jnp.stack([xp[:, :, dw:dw + wc, :] for dw in range(3)], axis=1)
    xs = xs.reshape(n, 3, (h + 2) * wc, c_in)

    # OIHW -> (tap, Cin, Cout), bf16 for the MXU.
    wk = jnp.transpose(weight, (2, 3, 1, 0)).reshape(9, c_in, c_out)
    wk = wk.astype(jnp.bfloat16)

    # Output-channel tiling (<= 256-wide, lane-dense).
    if c_out <= _TCO_MAX:
        tco, c_out_p = c_out, c_out
    else:
        tco = _TCO_MAX
        c_out_p = _round_up(c_out, _TCO_MAX)
        wk = jnp.pad(wk, ((0, 0), (0, 0), (0, c_out_p - c_out)))
    b2d = jnp.pad(bias.astype(jnp.float32),
                  (0, c_out_p - c_out)).reshape(1, c_out_p)

    out = pl.pallas_call(
        functools.partial(_conv3x3_relu_kernel, wc=wc),
        out_shape=jax.ShapeDtypeStruct((n, h * wc, c_out_p), jnp.float32),
        grid=(n, c_out_p // tco),
        in_specs=[
            pl.BlockSpec((1, 3, (h + 2) * wc, c_in), lambda i, j: (i, 0, 0, 0)),
            pl.BlockSpec((9, c_in, tco), lambda i, j: (0, 0, j)),
            pl.BlockSpec((1, tco), lambda i, j: (0, j)),
        ],
        out_specs=pl.BlockSpec((1, h * wc, tco), lambda i, j: (i, 0, j)),
        compiler_params=pltpu.CompilerParams(
            dimension_semantics=("parallel", "parallel")),
    )(xs, wk, b2d)

    out = out.reshape(n, h, wc, c_out_p)[:, :, :w, :c_out]   # drop align pad
    return jnp.transpose(out, (0, 3, 1, 2))                  # NHWC -> NCHW


if __name__ == "__main__":
    key = jax.random.PRNGKey(0)
    kx, kw, kb = jax.random.split(key, 3)

    N, CIN, H, W, COUT = 2, 4, 16, 16, 32
    x = jax.random.normal(kx, (N, CIN, H, W), jnp.float32)
    wgt = jax.random.normal(kw, (COUT, CIN, 3, 3), jnp.float32)
    wgt = wgt * (2.0 / (9.0 * CIN)) ** 0.5
    b = 0.1 * jax.random.normal(kb, (COUT,), jnp.float32)

    out = jax.jit(conv3x3_relu)(x, wgt, b)
    out = jax.block_until_ready(out)
    assert out.shape == (N, COUT, H, W), out.shape
    assert bool(jnp.all(jnp.isfinite(out)))

    # Full-f32 XLA reference (same semantics as the PyTorch module).
    ref = jax.lax.conv_general_dilated(
        x, wgt, window_strides=(1, 1), padding=((1, 1), (1, 1)),
        dimension_numbers=("NCHW", "OIHW", "NCHW"),
        precision=jax.lax.Precision.HIGHEST)
    ref = jnp.maximum(ref + b[None, :, None, None], 0.0)
    err = float(jnp.max(jnp.abs(out - ref)))
    assert err < 1e-1, err   # bf16 MXU inputs, f32 accumulation

    print("KERNEL_OK")
</pallas_src>

<mosaic_0001>
module attributes {stable_mosaic.version = 11 : i64} {
  func.func @_conv3x3_relu_kernel(%arg0: i32, %arg1: i32, %arg2: memref<1x3x288x4xf32, #tpu.memory_space<vmem>>, %arg3: memref<9x4x32xbf16, #tpu.memory_space<vmem>>, %arg4: memref<1x32xf32, #tpu.memory_space<vmem>>, %arg5: memref<1x256x32xf32, #tpu.memory_space<vmem>>) attributes {dimension_semantics = [#tpu.dimension_semantics<parallel>, #tpu.dimension_semantics<parallel>], iteration_bounds = array<i64: 2, 1>, scalar_prefetch = 0 : i64, scratch_operands = 0 : i64, tpu.core_type = #tpu.core_type<tc>, window_params = [{transform_indices = @transform_0, window_bounds = array<i64: 1, 3, 288, 4>}, {transform_indices = @transform_1, window_bounds = array<i64: 9, 4, 32>}, {transform_indices = @transform_2, window_bounds = array<i64: 1, 32>}, {transform_indices = @transform_3, window_bounds = array<i64: 1, 256, 32>}]} {
    %cst = arith.constant 0.000000e+00 : f32
    %0 = vector.broadcast %cst : f32 to vector<256x32xf32>
    %c0 = arith.constant 0 : index
    %c0_0 = arith.constant 0 : index
    %c0_1 = arith.constant 0 : index
    %c0_2 = arith.constant 0 : index
    %1 = vector.load %arg2[%c0, %c0_0, %c0_1, %c0_2] : memref<1x3x288x4xf32, #tpu.memory_space<vmem>>, vector<1x1x256x4xf32>
    %2 = vector.shape_cast %1 : vector<1x1x256x4xf32> to vector<256x4xf32>
    %3 = arith.truncf %2 : vector<256x4xf32> to vector<256x4xbf16>
    %c0_3 = arith.constant 0 : index
    %c0_4 = arith.constant 0 : index
    %c0_5 = arith.constant 0 : index
    %4 = vector.load %arg3[%c0_3, %c0_4, %c0_5] : memref<9x4x32xbf16, #tpu.memory_space<vmem>>, vector<1x4x32xbf16>
    %5 = vector.shape_cast %4 : vector<1x4x32xbf16> to vector<4x32xbf16>
    %cst_6 = arith.constant dense<0.000000e+00> : vector<256x32xf32>
    %6 = tpu.matmul %3, %5, %cst_6 {dimension_numbers = #tpu.dot_dimension_numbers<[1], [0], [0], [1], [0, 0, 1, 1], [], []>} : vector<256x4xbf16>, vector<4x32xbf16>, vector<256x32xf32> -> vector<256x32xf32>
    %7 = arith.addf %0, %6 : vector<256x32xf32>
    %c0_7 = arith.constant 0 : index
    %c1 = arith.constant 1 : index
    %c0_8 = arith.constant 0 : index
    %c0_9 = arith.constant 0 : index
    %8 = vector.load %arg2[%c0_7, %c1, %c0_8, %c0_9] : memref<1x3x288x4xf32, #tpu.memory_space<vmem>>, vector<1x1x256x4xf32>
    %9 = vector.shape_cast %8 : vector<1x1x256x4xf32> to vector<256x4xf32>
    %10 = arith.truncf %9 : vector<256x4xf32> to vector<256x4xbf16>
    %c1_10 = arith.constant 1 : index
    %c0_11 = arith.constant 0 : index
    %c0_12 = arith.constant 0 : index
    %11 = vector.load %arg3[%c1_10, %c0_11, %c0_12] : memref<9x4x32xbf16, #tpu.memory_space<vmem>>, vector<1x4x32xbf16>
    %12 = vector.shape_cast %11 : vector<1x4x32xbf16> to vector<4x32xbf16>
    %cst_13 = arith.constant dense<0.000000e+00> : vector<256x32xf32>
    %13 = tpu.matmul %10, %12, %cst_13 {dimension_numbers = #tpu.dot_dimension_numbers<[1], [0], [0], [1], [0, 0, 1, 1], [], []>} : vector<256x4xbf16>, vector<4x32xbf16>, vector<256x32xf32> -> vector<256x32xf32>
    %14 = arith.addf %7, %13 : vector<256x32xf32>
    %c0_14 = arith.constant 0 : index
    %c2 = arith.constant 2 : index
    %c0_15 = arith.constant 0 : index
    %c0_16 = arith.constant 0 : index
    %15 = vector.load %arg2[%c0_14, %c2, %c0_15, %c0_16] : memref<1x3x288x4xf32, #tpu.memory_space<vmem>>, vector<1x1x256x4xf32>
    %16 = vector.shape_cast %15 : vector<1x1x256x4xf32> to vector<256x4xf32>
    %17 = arith.truncf %16 : vector<256x4xf32> to vector<256x4xbf16>
    %c2_17 = arith.constant 2 : index
    %c0_18 = arith.constant 0 : index
    %c0_19 = arith.constant 0 : index
    %18 = vector.load %arg3[%c2_17, %c0_18, %c0_19] : memref<9x4x32xbf16, #tpu.memory_space<vmem>>, vector<1x4x32xbf16>
    %19 = vector.shape_cast %18 : vector<1x4x32xbf16> to vector<4x32xbf16>
    %cst_20 = arith.constant dense<0.000000e+00> : vector<256x32xf32>
    %20 = tpu.matmul %17, %19, %cst_20 {dimension_numbers = #tpu.dot_dimension_numbers<[1], [0], [0], [1], [0, 0, 1, 1], [], []>} : vector<256x4xbf16>, vector<4x32xbf16>, vector<256x32xf32> -> vector<256x32xf32>
    %21 = arith.addf %14, %20 : vector<256x32xf32>
    %c0_21 = arith.constant 0 : index
    %c0_22 = arith.constant 0 : index
    %c16 = arith.constant 16 : index
    %c0_23 = arith.constant 0 : index
    %22 = vector.load %arg2[%c0_21, %c0_22, %c16, %c0_23] : memref<1x3x288x4xf32, #tpu.memory_space<vmem>>, vector<1x1x256x4xf32>
    %23 = vector.shape_cast %22 : vector<1x1x256x4xf32> to vector<256x4xf32>
    %24 = arith.truncf %23 : vector<256x4xf32> to vector<256x4xbf16>
    %c3 = arith.constant 3 : index
    %c0_24 = arith.constant 0 : index
    %c0_25 = arith.constant 0 : index
    %25 = vector.load %arg3[%c3, %c0_24, %c0_25] : memref<9x4x32xbf16, #tpu.memory_space<vmem>>, vector<1x4x32xbf16>
    %26 = vector.shape_cast %25 : vector<1x4x32xbf16> to vector<4x32xbf16>
    %cst_26 = arith.constant dense<0.000000e+00> : vector<256x32xf32>
    %27 = tpu.matmul %24, %26, %cst_26 {dimension_numbers = #tpu.dot_dimension_numbers<[1], [0], [0], [1], [0, 0, 1, 1], [], []>} : vector<256x4xbf16>, vector<4x32xbf16>, vector<256x32xf32> -> vector<256x32xf32>
    %28 = arith.addf %21, %27 : vector<256x32xf32>
    %c0_27 = arith.constant 0 : index
    %c1_28 = arith.constant 1 : index
    %c16_29 = arith.constant 16 : index
    %c0_30 = arith.constant 0 : index
    %29 = vector.load %arg2[%c0_27, %c1_28, %c16_29, %c0_30] : memref<1x3x288x4xf32, #tpu.memory_space<vmem>>, vector<1x1x256x4xf32>
    %30 = vector.shape_cast %29 : vector<1x1x256x4xf32> to vector<256x4xf32>
    %31 = arith.truncf %30 : vector<256x4xf32> to vector<256x4xbf16>
    %c4 = arith.constant 4 : index
    %c0_31 = arith.constant 0 : index
    %c0_32 = arith.constant 0 : index
    %32 = vector.load %arg3[%c4, %c0_31, %c0_32] : memref<9x4x32xbf16, #tpu.memory_space<vmem>>, vector<1x4x32xbf16>
    %33 = vector.shape_cast %32 : vector<1x4x32xbf16> to vector<4x32xbf16>
    %cst_33 = arith.constant dense<0.000000e+00> : vector<256x32xf32>
    %34 = tpu.matmul %31, %33, %cst_33 {dimension_numbers = #tpu.dot_dimension_numbers<[1], [0], [0], [1], [0, 0, 1, 1], [], []>} : vector<256x4xbf16>, vector<4x32xbf16>, vector<256x32xf32> -> vector<256x32xf32>
    %35 = arith.addf %28, %34 : vector<256x32xf32>
    %c0_34 = arith.constant 0 : index
    %c2_35 = arith.constant 2 : index
    %c16_36 = arith.constant 16 : index
    %c0_37 = arith.constant 0 : index
    %36 = vector.load %arg2[%c0_34, %c2_35, %c16_36, %c0_37] : memref<1x3x288x4xf32, #tpu.memory_space<vmem>>, vector<1x1x256x4xf32>
    %37 = vector.shape_cast %36 : vector<1x1x256x4xf32> to vector<256x4xf32>
    %38 = arith.truncf %37 : vector<256x4xf32> to vector<256x4xbf16>
    %c5 = arith.constant 5 : index
    %c0_38 = arith.constant 0 : index
    %c0_39 = arith.constant 0 : index
    %39 = vector.load %arg3[%c5, %c0_38, %c0_39] : memref<9x4x32xbf16, #tpu.memory_space<vmem>>, vector<1x4x32xbf16>
    %40 = vector.shape_cast %39 : vector<1x4x32xbf16> to vector<4x32xbf16>
    %cst_40 = arith.constant dense<0.000000e+00> : vector<256x32xf32>
    %41 = tpu.matmul %38, %40, %cst_40 {dimension_numbers = #tpu.dot_dimension_numbers<[1], [0], [0], [1], [0, 0, 1, 1], [], []>} : vector<256x4xbf16>, vector<4x32xbf16>, vector<256x32xf32> -> vector<256x32xf32>
    %42 = arith.addf %35, %41 : vector<256x32xf32>
    %c0_41 = arith.constant 0 : index
    %c0_42 = arith.constant 0 : index
    %c32 = arith.constant 32 : index
    %c0_43 = arith.constant 0 : index
    %43 = vector.load %arg2[%c0_41, %c0_42, %c32, %c0_43] : memref<1x3x288x4xf32, #tpu.memory_space<vmem>>, vector<1x1x256x4xf32>
    %44 = vector.shape_cast %43 : vector<1x1x256x4xf32> to vector<256x4xf32>
    %45 = arith.truncf %44 : vector<256x4xf32> to vector<256x4xbf16>
    %c6 = arith.constant 6 : index
    %c0_44 = arith.constant 0 : index
    %c0_45 = arith.constant 0 : index
    %46 = vector.load %arg3[%c6, %c0_44, %c0_45] : memref<9x4x32xbf16, #tpu.memory_space<vmem>>, vector<1x4x32xbf16>
    %47 = vector.shape_cast %46 : vector<1x4x32xbf16> to vector<4x32xbf16>
    %cst_46 = arith.constant dense<0.000000e+00> : vector<256x32xf32>
    %48 = tpu.matmul %45, %47, %cst_46 {dimension_numbers = #tpu.dot_dimension_numbers<[1], [0], [0], [1], [0, 0, 1, 1], [], []>} : vector<256x4xbf16>, vector<4x32xbf16>, vector<256x32xf32> -> vector<256x32xf32>
    %49 = arith.addf %42, %48 : vector<256x32xf32>
    %c0_47 = arith.constant 0 : index
    %c1_48 = arith.constant 1 : index
    %c32_49 = arith.constant 32 : index
    %c0_50 = arith.constant 0 : index
    %50 = vector.load %arg2[%c0_47, %c1_48, %c32_49, %c0_50] : memref<1x3x288x4xf32, #tpu.memory_space<vmem>>, vector<1x1x256x4xf32>
    %51 = vector.shape_cast %50 : vector<1x1x256x4xf32> to vector<256x4xf32>
    %52 = arith.truncf %51 : vector<256x4xf32> to vector<256x4xbf16>
    %c7 = arith.constant 7 : index
    %c0_51 = arith.constant 0 : index
    %c0_52 = arith.constant 0 : index
    %53 = vector.load %arg3[%c7, %c0_51, %c0_52] : memref<9x4x32xbf16, #tpu.memory_space<vmem>>, vector<1x4x32xbf16>
    %54 = vector.shape_cast %53 : vector<1x4x32xbf16> to vector<4x32xbf16>
    %cst_53 = arith.constant dense<0.000000e+00> : vector<256x32xf32>
    %55 = tpu.matmul %52, %54, %cst_53 {dimension_numbers = #tpu.dot_dimension_numbers<[1], [0], [0], [1], [0, 0, 1, 1], [], []>} : vector<256x4xbf16>, vector<4x32xbf16>, vector<256x32xf32> -> vector<256x32xf32>
    %56 = arith.addf %49, %55 : vector<256x32xf32>
    %c0_54 = arith.constant 0 : index
    %c2_55 = arith.constant 2 : index
    %c32_56 = arith.constant 32 : index
    %c0_57 = arith.constant 0 : index
    %57 = vector.load %arg2[%c0_54, %c2_55, %c32_56, %c0_57] : memref<1x3x288x4xf32, #tpu.memory_space<vmem>>, vector<1x1x256x4xf32>
    %58 = vector.shape_cast %57 : vector<1x1x256x4xf32> to vector<256x4xf32>
    %59 = arith.truncf %58 : vector<256x4xf32> to vector<256x4xbf16>
    %c8 = arith.constant 8 : index
    %c0_58 = arith.constant 0 : index
    %c0_59 = arith.constant 0 : index
    %60 = vector.load %arg3[%c8, %c0_58, %c0_59] : memref<9x4x32xbf16, #tpu.memory_space<vmem>>, vector<1x4x32xbf16>
    %61 = vector.shape_cast %60 : vector<1x4x32xbf16> to vector<4x32xbf16>
    %cst_60 = arith.constant dense<0.000000e+00> : vector<256x32xf32>
    %62 = tpu.matmul %59, %61, %cst_60 {dimension_numbers = #tpu.dot_dimension_numbers<[1], [0], [0], [1], [0, 0, 1, 1], [], []>} : vector<256x4xbf16>, vector<4x32xbf16>, vector<256x32xf32> -> vector<256x32xf32>
    %63 = arith.addf %56, %62 : vector<256x32xf32>
    %c0_61 = arith.constant 0 : index
    %c0_62 = arith.constant 0 : index
    %64 = vector.load %arg4[%c0_61, %c0_62] : memref<1x32xf32, #tpu.memory_space<vmem>>, vector<1x32xf32>
    %65 = vector.broadcast %64 : vector<1x32xf32> to vector<256x32xf32>
    %66 = arith.addf %63, %65 : vector<256x32xf32>
    %cst_63 = arith.constant 0.000000e+00 : f32
    %67 = vector.broadcast %cst_63 : f32 to vector<256x32xf32>
    %68 = arith.maximumf %66, %67 : vector<256x32xf32>
    %c0_64 = arith.constant 0 : index
    %c0_65 = arith.constant 0 : index
    %c0_66 = arith.constant 0 : index
    %69 = vector.load %arg5[%c0_64, %c0_65, %c0_66] : memref<1x256x32xf32, #tpu.memory_space<vmem>>, vector<1x256x32xf32>
    %70 = vector.shape_cast %69 : vector<1x256x32xf32> to vector<256x32xf32>
    %71 = vector.shape_cast %68 : vector<256x32xf32> to vector<1x256x32xf32>
    tpu.vector_store %arg5[%c0_64, %c0_65, %c0_66], %71 {strides = array<i32>} : memref<1x256x32xf32, #tpu.memory_space<vmem>>, vector<1x256x32xf32>,
    return
  }
  func.func @transform_0(%arg0: i32, %arg1: i32) -> (i32, i32, i32, i32) {
    %c0_i32 = arith.constant 0 : i32
    %c0_i32_0 = arith.constant 0 : i32
    %c0_i32_1 = arith.constant 0 : i32
    %c0_i32_2 = arith.constant 0 : i32
    return %arg0, %c0_i32, %c0_i32_0, %c0_i32_1 : i32, i32, i32, i32
  }
  func.func @transform_1(%arg0: i32, %arg1: i32) -> (i32, i32, i32) {
    %c0_i32 = arith.constant 0 : i32
    %c0_i32_0 = arith.constant 0 : i32
    %c0_i32_1 = arith.constant 0 : i32
    return %c0_i32, %c0_i32_0, %arg1 : i32, i32, i32
  }
  func.func @transform_2(%arg0: i32, %arg1: i32) -> (i32, i32) {
    %c0_i32 = arith.constant 0 : i32
    %c0_i32_0 = arith.constant 0 : i32
    return %c0_i32, %arg1 : i32, i32
  }
  func.func @transform_3(%arg0: i32, %arg1: i32) -> (i32, i32, i32) {
    %c0_i32 = arith.constant 0 : i32
    %c0_i32_0 = arith.constant 0 : i32
    return %arg0, %c0_i32, %arg1 : i32, i32, i32
  }
}

</mosaic_0001>

<bundles_post_ra>
// kernel: conv3x3_relu.1
= control target key start
LH: loop header
LB: loop body
LE: loop exit
PB: predicated region body
PF: predicated region fallthrough
CT: control target
= control target key end

     0   :  { %8 = vsyncpa [#allocation3], 0  ;;  %s3810_s0 = inlined_call_operand.vmem [shape: f32[2,3,288,4], index: 0, kind: input, shape index: {}]   ;;  %s3811_s1 = inlined_call_operand.vmem [shape: bf16[9,4,32], index: 1, kind: input, shape index: {}]   ;;  %s3812_s2 = inlined_call_operand.vmem [shape: f32[1,32], index: 2, kind: input, shape index: {}]   ;;  %s3813_s3 = inlined_call_operand.hbm [shape: f32[2,256,32], index: 3, kind: output, shape index: {}]  }
   0x1   :  { %10 = vsyncpa [#allocation3 + $0x1], 0  ;;  %s2892_s12 = smov 0   ;;  %s2894_s13 = smov 0  }
   0x2   :  { %s2896_s14 = smov 0   ;;  %s2898_s15 = smov 0  }
   0x3   :  { %s2900_s16 = smov 0   ;;  %s2902_s17 = smov 0  }
   0x4 LB: > { %s2369_s18 = sadd.s32 4294967295, %s2868_s17   ;;  %s2370_s19 = sadd.s32 4294967294, %s2868_s17   ;;  %s2868_s17 = sphi %s2902_s17, %s16_s17   ;;  %s2864_s16 = sphi %s2900_s16, %s3862_s16   ;;  %s2860_s15 = sphi %s2898_s15, %s3861_s15   ;;  %s2856_s14 = sphi %s2896_s14, %s3860_s14   ;;  %s2852_s13 = sphi %s2894_s13, %s3859_s13   ;;  %s2848_s12 = sphi %s2892_s12, %s3858_s12  }
   0x5   : > { %s28_s20 = sadd.s32 1, %s2864_s16  ;;  %s115_s21 = sadd.s32 1, %s2856_s14 }
   0x6   : > { %p30_p0 = scmp.ge.s32.totalorder %s28_s20, 2  ;;  %p125_p1 = scmp.ne.s32.totalorder %s2856_s14, %s2852_s13 }
   0x7   : > { %p126_p2 = scmp.eq.s32.totalorder %s2369_s18, 1  ;;  %p131_p3 = scmp.ne.s32.totalorder %s2852_s13, %s2848_s12 }
   0x8   : > { %s3864_s20 = smov (%p30_p0, %s28_s20), 0  ;;  %p132_p5 = scmp.eq.s32.totalorder %s2370_s19, 1 }
   0x9   : > { %p2932_p4 = por %p126_p2, %p125_p1  ;;  %s110_s23 = ssub.s32 %s2864_s16, %s3864_s20 }
   0xa   : > { %p2375_p6 = scmp.ge.s32.totalorder %s2868_s17, 1  ;;  %p113_p7 = scmp.eq.s32.totalorder %s110_s23, 0 }
   0xb   : > { %p2939_p8 = por %p132_p5, %p131_p3  ;;  %p171_p9 = scmp.lt.s32.totalorder %s2868_s17, 3 }
   0xc   : > { %s2945_s25 = scalar_select %p113_p7, %s2856_s14, %s115_s21  }
   0xd   : > { %p172_p10 = pnand %p2375_p6, %p171_p9 }
   0xf   : > { %175 = sbr.rel (%p172_p10) target bundleno = 745 (0x2e9), region = 32 }
  0x14   : > { %v2410_v0 = vld [vmem:[%s3811_s1 + $0x2] sm:$0x3]  ;;  %vm364_vm0 = vcmask 1041408   ;;  %p202_p11 = scmp.lt.s32.totalorder %s2860_s15, 1  ;;  %v2475_v2 = vld [vmem:[%s3811_s1 + $0x4] sm:$0x3] }
  0x15   : > { %v366_v1 = vsel %vm364_vm0, %v2410_v0, 0  ;;  %v2492_v3 = vld [vmem:[%s3811_s1 + $0x6] sm:$0x3]  ;;  %v697_v4 = vsel %vm364_vm0, %v2475_v2, 0  ;;  %v263_v6 = vld [vmem:[%s3811_s1] sm:$0x3] }
  0x16   : > { %2728 = vmatpush.bf16.msra.mxu1 %v366_v1  ;;  %2729 = vmatpush.bf16.msra.mxu2 %v366_v1  ;;  %s203_s5 = scalar_select %p202_p11, %s2860_s15, 1  ;;  %v919_v5 = vsel %vm364_vm0, %v2492_v3, 0  ;;  %v506_v7 = vsel %vm364_vm0, %v263_v6, 0  ;;  %v2541_v8 = vld [vmem:[%s3811_s1 + $0x8] sm:$0x3]  ;;  %vm315_vm1 = vcmask 31744  }
  0x17   : > { %2730 = vmatpush.bf16.msra.mxu3 %v366_v1  ;;  %375 = vmatpush.bf16.msra.mxu0 %v366_v1  ;;  %v1141_v9 = vsel %vm364_vm0, %v2541_v8, 0  ;;  %v2607_v46 = vld [vmem:[%s3811_s1 + $0xc] sm:$0x3]  ;;  %v2656_v48 = vld [vmem:[%s3811_s1 + $0xe] sm:$0x3]  ;;  %vm2220_vm2 = vcmask 261120  }
  0x18   : > { %s2731_s10 = smul.u32 864, %s203_s5  ;;  %v1585_v47 = vsel %vm364_vm0, %v2607_v46, 0  ;;  %v2590_v49 = vld [vmem:[%s3811_s1 + $0xa] sm:$0x3]  ;;  %v1807_v50 = vsel %vm364_vm0, %v2656_v48, 0  ;;  %s199_s5 = sand.u32 1, %s2852_s13  }
  0x19   : > { %v1363_v51 = vsel %vm364_vm0, %v2590_v49, 0  ;;  %v2705_v52 = vld [vmem:[%s3811_s1 + $0x10] sm:$0x3]  ;;  %s2376_s8 = sshll.u32 %s199_s5, 8  ;;  %s2810_s30 = scalar_lea.hbm %s3813_s3, 512 }
  0x1a   : > { %706 = vmatpush.bf16.msrb.mxu2 %v697_v4  ;;  %515 = vmatpush.bf16.msrb.mxu1 %v506_v7  ;;  %s2972_s19 = scalar_lea.vmem %s3810_s0, %s2731_s10  ;;  %v2029_v53 = vsel %vm364_vm0, %v2705_v52, 0  ;;  %s3579_s9 = scalar_lea.vmem [#allocation2], %s2376_s8 }
  0x1b   : > { %928 = vmatpush.bf16.msrb.mxu3 %v919_v5  ;;  %1150 = vmatpush.bf16.msrb.mxu0 %v1141_v9  ;;  %v2386_v10 = vld [vmem:[%s2972_s19 + $0x160] sm:$0xff]  ;;  %v2387_v11 = vld [vmem:[%s2972_s19 + $0x168] sm:$0xff]  ;;  %v2388_v22 = vld [vmem:[%s2972_s19 + $0x170] sm:$0xff]  ;;  %s2727_s10 = sshll.u32 %s2860_s15, 8  ;;  %s2267_s21 = sshll.u32 %s3579_s9, 4  ;;  %s2268_s21 = int_to_ptr.vmem [resolvable:$true] %s2267_s21 }
  0x1c   : > { %v2394_v12 = vld [vmem:[%s2972_s19 + $0x1a0] sm:$0xff]  ;;  %v2977_v13 = vpack.c.bf16 %v2387_v11, %v2386_v10  ;;  %v2395_v14 = vld [vmem:[%s2972_s19 + $0x1a8] sm:$0xff]  ;;  %v2389_v23 = vld [vmem:[%s2972_s19 + $0x178] sm:$0xff]  ;;  %s2254_s15 = scalar_lea.sflag [#allocation3], %s199_s5 }
  0x1d   : > { %v2402_v15 = vld [vmem:[%s2972_s19 + $0x1e0] sm:$0xff]  ;;  %v2403_v16 = vld [vmem:[%s2972_s19 + $0x1e8] sm:$0xff]  ;;  %v2982_v17 = vpack.c.bf16 %v2395_v14, %v2394_v12  ;;  %v2396_v24 = vld [vmem:[%s2972_s19 + $0x1b0] sm:$0xff]  ;;  %v3003_v30 = vpack.c.bf16 %v2389_v23, %v2388_v22 }
  0x1e   : > { %v2984_v18 = vpack.c.bf16 %v2403_v16, %v2402_v15  ;;  %v2378_v19 = vld [vmem:[%s2972_s19 + $0x120] sm:$0xff]  ;;  %v2379_v20 = vld [vmem:[%s2972_s19 + $0x128] sm:$0xff]  ;;  %2415 = vmatmul.msk.bf16.vlgmr.msra.gmra.mxu1 %vm315_vm1, %v2977_v13  ;;  %v2397_v25 = vld [vmem:[%s2972_s19 + $0x1b8] sm:$0xff] }
  0x1f   : > { %v297_v21 = vpack.c.bf16 %v2379_v20, %v2378_v19  ;;  %2419 = vmatmul.msk.bf16.vlgmr.msra.gmra.mxu2 %vm315_vm1, %v2982_v17  ;;  %v2404_v26 = vld [vmem:[%s2972_s19 + $0x1f0] sm:$0xff]  ;;  %v2405_v27 = vld [vmem:[%s2972_s19 + $0x1f8] sm:$0xff]  ;;  %v3005_v31 = vpack.c.bf16 %v2397_v25, %v2396_v24  ;;  %v2390_v34 = vld [vmem:[%s2972_s19 + $0x180] sm:$0xff]  ;;  %1372 = vmatpush.bf16.msra.mxu1 %v1363_v51 }
  0x20   : > { %2423 = vmatmul.msk.bf16.vlgmr.msra.gmra.mxu3 %vm315_vm1, %v2984_v18  ;;  %v2380_v28 = vld [vmem:[%s2972_s19 + $0x130] sm:$0xff]  ;;  %v2381_v29 = vld [vmem:[%s2972_s19 + $0x138] sm:$0xff]  ;;  %v3007_v32 = vpack.c.bf16 %v2405_v27, %v2404_v26  ;;  %v2391_v35 = vld [vmem:[%s2972_s19 + $0x188] sm:$0xff]  ;;  %1594 = vmatpush.bf16.msra.mxu2 %v1585_v47 }
  0x21   : > { %2411 = vmatmul.msk.bf16.vlgmr.msra.gmra.mxu0 %vm315_vm1, %v297_v21  ;;  %v298_v33 = vpack.c.bf16 %v2381_v29, %v2380_v28  ;;  %v2398_v36 = vld [vmem:[%s2972_s19 + $0x1c0] sm:$0xff]  ;;  %v2399_v37 = vld [vmem:[%s2972_s19 + $0x1c8] sm:$0xff]  ;;  %v3024_v42 = vpack.c.bf16 %v2391_v35, %v2390_v34  ;;  %1816 = vmatpush.bf16.msra.mxu3 %v1807_v50  ;;  %v2392_v54 = vld [vmem:[%s2972_s19 + $0x190] sm:$0xff] }
  0x22   : > { %v2406_v38 = vld [vmem:[%s2972_s19 + $0x200] sm:$0xff]  ;;  %v2407_v39 = vld [vmem:[%s2972_s19 + $0x208] sm:$0xff]  ;;  %v3026_v43 = vpack.c.bf16 %v2399_v37, %v2398_v36  ;;  %2038 = vmatpush.bf16.msra.mxu0 %v2029_v53  ;;  %v2393_v55 = vld [vmem:[%s2972_s19 + $0x198] sm:$0xff] }
  0x23   : > { %v2382_v40 = vld [vmem:[%s2972_s19 + $0x140] sm:$0xff]  ;;  %v2383_v41 = vld [vmem:[%s2972_s19 + $0x148] sm:$0xff]  ;;  %v3028_v44 = vpack.c.bf16 %v2407_v39, %v2406_v38  ;;  %v2400_v56 = vld [vmem:[%s2972_s19 + $0x1d0] sm:$0xff]  ;;  %v3064_v62 = vpack.c.bf16 %v2393_v55, %v2392_v54 }
  0x24   : > { %v3030_v45 = vpack.c.bf16 %v2383_v41, %v2382_v40  ;;  %v2401_v57 = vld [vmem:[%s2972_s19 + $0x1d8] sm:$0xff]  ;;  %v2408_v58 = vld [vmem:[%s2972_s19 + $0x210] sm:$0xff]  ;;  %v215_v2 = vld [vmem:[%s2972_s19] sm:$0xff] }
  0x25   : > { %v2409_v59 = vld [vmem:[%s2972_s19 + $0x218] sm:$0xff]  ;;  %v2384_v60 = vld [vmem:[%s2972_s19 + $0x150] sm:$0xff]  ;;  %v3066_v63 = vpack.c.bf16 %v2401_v57, %v2400_v56  ;;  %v216_v3 = vld [vmem:[%s2972_s19 + $0x8] sm:$0xff] }
  0x26   : > { %v2385_v61 = vld [vmem:[%s2972_s19 + $0x158] sm:$0xff]  ;;  %v3068_v0 = vpack.c.bf16 %v2409_v59, %v2408_v58  ;;  %v2443_v4 = vld [vmem:[%s2972_s19 + $0x240] sm:$0xff]  ;;  %v2444_v5 = vld [vmem:[%s2972_s19 + $0x248] sm:$0xff]  ;;  %v247_v8 = vpack.c.bf16 %v216_v3, %v215_v2 }
  0x27   : > { %v3070_v1 = vpack.c.bf16 %v2385_v61, %v2384_v60  ;;  %v820_v6 = vld [vmem:[%s2972_s19 + $0x10] sm:$0xff]  ;;  %v821_v7 = vld [vmem:[%s2972_s19 + $0x18] sm:$0xff]  ;;  %v630_v9 = vpack.c.bf16 %v2444_v5, %v2443_v4  ;;  %v822_v14 = vld [vmem:[%s2972_s19 + $0x20] sm:$0xff] }
  0x28   : > { %v852_v10 = vpack.c.bf16 %v821_v7, %v820_v6  ;;  %v2445_v11 = vld [vmem:[%s2972_s19 + $0x250] sm:$0xff]  ;;  %v2446_v12 = vld [vmem:[%s2972_s19 + $0x258] sm:$0xff]  ;;  %v823_v15 = vld [vmem:[%s2972_s19 + $0x28] sm:$0xff] }
  0x29   : > { %v3094_v16 = vpack.c.bf16 %v2446_v12, %v2445_v11  ;;  %v3096_v19 = vpack.c.bf16 %v823_v15, %v822_v14  ;;  %v2447_v20 = vld [vmem:[%s2972_s19 + $0x260] sm:$0xff]  ;;  %v2448_v21 = vld [vmem:[%s2972_s19 + $0x268] sm:$0xff]  ;;  %v824_v22 = vld [vmem:[%s2972_s19 + $0x30] sm:$0xff] }
  0x2a   : > { %v825_v23 = vld [vmem:[%s2972_s19 + $0x38] sm:$0xff]  ;;  %v3109_v24 = vpack.c.bf16 %v2448_v21, %v2447_v20  ;;  %v2449_v26 = vld [vmem:[%s2972_s19 + $0x270] sm:$0xff]  ;;  %v826_v28 = vld [vmem:[%s2972_s19 + $0x40] sm:$0xff] }
  0x2b   : > { %v3111_v25 = vpack.c.bf16 %v825_v23, %v824_v22  ;;  %v2450_v27 = vld [vmem:[%s2972_s19 + $0x278] sm:$0xff]  ;;  %v827_v29 = vld [vmem:[%s2972_s19 + $0x48] sm:$0xff]  ;;  %v2451_v35 = vld [vmem:[%s2972_s19 + $0x280] sm:$0xff] }
  0x2c   : > { %v3127_v34 = vpack.c.bf16 %v827_v29, %v826_v28  ;;  %v2452_v36 = vld [vmem:[%s2972_s19 + $0x288] sm:$0xff]  ;;  %v828_v37 = vld [vmem:[%s2972_s19 + $0x50] sm:$0xff]  ;;  %v829_v38 = vld [vmem:[%s2972_s19 + $0x58] sm:$0xff] }
  0x2d   : > { %v3143_v40 = vpack.c.bf16 %v2452_v36, %v2451_v35  ;;  %v3145_v41 = vpack.c.bf16 %v829_v38, %v828_v37  ;;  %v2453_v50 = vld [vmem:[%s2972_s19 + $0x290] sm:$0xff]  ;;  %v2454_v51 = vld [vmem:[%s2972_s19 + $0x298] sm:$0xff]  ;;  %v830_v52 = vld [vmem:[%s2972_s19 + $0x60] sm:$0xff] }
  0x2e   : > { %2416 = vmatmul.msk.bf16.gmra.mxu1 %vm315_vm1, %v3003_v30  ;;  %v831_v53 = vld [vmem:[%s2972_s19 + $0x68] sm:$0xff]  ;;  %v3175_v56 = vpack.c.bf16 %v2454_v51, %v2453_v50  ;;  %v2455_v3 = vld [vmem:[%s2972_s19 + $0x2a0] sm:$0xff]  ;;  %v832_v5 = vld [vmem:[%s2972_s19 + $0x70] sm:$0xff] }
  0x2f   : > { %2420 = vmatmul.msk.bf16.gmra.mxu2 %vm315_vm1, %v3005_v31  ;;  %v3177_v57 = vpack.c.bf16 %v831_v53, %v830_v52  ;;  %v2456_v4 = vld [vmem:[%s2972_s19 + $0x2a8] sm:$0xff]  ;;  %v833_v6 = vld [vmem:[%s2972_s19 + $0x78] sm:$0xff]  ;;  %v2457_v21 = vld [vmem:[%s2972_s19 + $0x2b0] sm:$0xff] }
  0x30   : > { %2424 = vmatmul.msk.bf16.gmra.mxu3 %vm315_vm1, %v3007_v32  ;;  %v2458_v22 = vld [vmem:[%s2972_s19 + $0x2b8] sm:$0xff]  ;;  %v834_v23 = vld [vmem:[%s2972_s19 + $0x80] sm:$0xff]  ;;  %v2460_v53 = vld [vmem:[%s2972_s19 + $0x2c8] sm:$0xff] }
  0x31   : > { %2412 = vmatmul.msk.bf16.gmra.mxu0 %vm315_vm1, %v298_v33  ;;  %v3239_v29 = vpack.c.bf16 %v2458_v22, %v2457_v21  ;;  %v2459_v52 = vld [vmem:[%s2972_s19 + $0x2c0] sm:$0xff] }
  0x32   : > { %v3269_v22 = vpack.c.bf16 %v2460_v53, %v2459_v52 }
  0x33   : > { %3828 = vst [vmem:[#allocation11_spill] sm:$0xff] %v3239_v29 }
  0x34   : > { %3832 = vst [vmem:[#allocation15_spill] sm:$0xff] %v3269_v22 }
  0x3e   : > { %2417 = vmatmul.msk.bf16.gmra.mxu1 %vm315_vm1, %v3024_v42 }
  0x3f   : > { %2421 = vmatmul.msk.bf16.gmra.mxu2 %vm315_vm1, %v3026_v43 }
  0x40   : > { %2425 = vmatmul.msk.bf16.gmra.mxu3 %vm315_vm1, %v3028_v44 }
  0x41   : > { %2413 = vmatmul.msk.bf16.gmra.mxu0 %vm315_vm1, %v3030_v45 }
  0x4e   : > { %2418 = vmatmul.msk.bf16.gmra.mxu1 %vm315_vm1, %v3064_v62 }
  0x4f   : > { %2422 = vmatmul.msk.bf16.gmra.mxu2 %vm315_vm1, %v3066_v63 }
  0x50   : > { %2426 = vmatmul.msk.bf16.gmra.mxu3 %vm315_vm1, %v3068_v0 }
  0x51   : > { %2414 = vmatmul.msk.bf16.gmra.mxu0 %vm315_vm1, %v3070_v1 }
  0x5e   : > { %2427 = vmatmul.msk.bf16.vlgmr.msrb.gmra.mxu1 %vm315_vm1, %v247_v8 }
  0x5f   : > { %2476 = vmatmul.msk.bf16.vlgmr.msrb.gmra.mxu2 %vm315_vm1, %v630_v9  ;;  %v3207_v9 = vpack.c.bf16 %v2456_v4, %v2455_v3  ;;  %v836_v3 = vld [vmem:[%s2972_s19 + $0x90] sm:$0xff]  ;;  %v837_v4 = vld [vmem:[%s2972_s19 + $0x98] sm:$0xff] }
  0x60   : > { %2493 = vmatmul.msk.bf16.vlgmr.msrb.gmra.mxu3 %vm315_vm1, %v852_v10 }
  0x61   : > { %2542 = vmatmul.msk.bf16.vlgmr.msrb.gmra.mxu0 %vm315_vm1, %v298_v33  ;;  %v3125_v33 = vpack.c.bf16 %v2450_v27, %v2449_v26  ;;  %v835_v26 = vld [vmem:[%s2972_s19 + $0x88] sm:$0xff] }
  0x62   : > { %v3241_v35 = vpack.c.bf16 %v835_v26, %v834_v23 }
  0x64   : > { %3829 = vst [vmem:[#allocation12_spill] sm:$0xff] %v3241_v35 }
  0x6e   : > { %2428 = vmatmul.msk.bf16.gmra.mxu1 %vm315_vm1, %v852_v10  ;;  %v3209_v10 = vpack.c.bf16 %v833_v6, %v832_v5 }
  0x6f   : > { %2477 = vmatmul.msk.bf16.gmra.mxu2 %vm315_vm1, %v3094_v16 }
  0x70   : > { %2494 = vmatmul.msk.bf16.gmra.mxu3 %vm315_vm1, %v3096_v19  ;;  %3825 = vst [vmem:[#allocation8_spill] sm:$0xff] %v3209_v10 }
  0x71   : > { %2543 = vmatmul.msk.bf16.gmra.mxu0 %vm315_vm1, %v3030_v45 }
  0x7e   : > { %2429 = vmatmul.msk.bf16.gmra.mxu1 %vm315_vm1, %v3096_v19 }
  0x7f   : > { %2478 = vmatmul.msk.bf16.gmra.mxu2 %vm315_vm1, %v3109_v24 }
  0x80   : > { %2495 = vmatmul.msk.bf16.gmra.mxu3 %vm315_vm1, %v3111_v25 }
  0x81   : > { %2544 = vmatmul.msk.bf16.gmra.mxu0 %vm315_vm1, %v3070_v1 }
  0x8e   : > { %2430 = vmatmul.msk.bf16.gmra.mxu1 %vm315_vm1, %v3111_v25 }
  0x8f   : > { %2479 = vmatmul.msk.bf16.gmra.mxu2 %vm315_vm1, %v3125_v33 }
  0x90   : > { %2496 = vmatmul.msk.bf16.gmra.mxu3 %vm315_vm1, %v3127_v34 }
  0x91   : > { %2545 = vmatmul.msk.bf16.gmra.mxu0 %vm315_vm1, %v2977_v13 }
  0x9b   : > { %v3141_v39 = vpop.f32.mrf.mxu1 }
  0x9e   : > { %v3147_v46 = vpop.f32.mrf.mxu0  ;;  %2431 = vmatmul.msk.bf16.gmra.mxu1 %vm315_vm1, %v3127_v34 }
  0x9f   : > { %2480 = vmatmul.msk.bf16.gmra.mxu2 %vm315_vm1, %v3143_v40 }
  0xa0   : > { %2497 = vmatmul.msk.bf16.gmra.mxu3 %vm315_vm1, %v3145_v41 }
  0xa1   : > { %2546 = vmatmul.msk.bf16.gmra.mxu0 %vm315_vm1, %v3003_v30 }
  0xa2   : > { %v3157_v13 = vpop.f32.mrf.mxu2 }
  0xa3   : > { %v3159_v47 = vpop.f32.mrf.mxu3  ;;  %v3161_v48 = vpop.f32.mrf.mxu1 }
  0xa6   : > { %v3163_v49 = vpop.f32.mrf.mxu0 }
  0xaa   : > { %v3169_v54 = vpop.f32.mrf.mxu2 }
  0xab   : > { %v3171_v55 = vpop.f32.mrf.mxu3  ;;  %v3173_v30 = vpop.f32.mrf.mxu1 }
  0xac   : > { %3822 = vst [vmem:[#allocation5_spill] sm:$0xff] %v3171_v55 }
  0xae   : > { %v3179_v58 = vpop.f32.mrf.mxu0  ;;  %2432 = vmatmul.msk.bf16.gmra.mxu1 %vm315_vm1, %v3145_v41 }
  0xaf   : > { %2481 = vmatmul.msk.bf16.gmra.mxu2 %vm315_vm1, %v3175_v56 }
  0xb0   : > { %2498 = vmatmul.msk.bf16.gmra.mxu3 %vm315_vm1, %v3177_v57 }
  0xb1   : > { %2547 = vmatmul.msk.bf16.gmra.mxu0 %vm315_vm1, %v3024_v42 }
  0xb2   : > { %v3189_v59 = vpop.f32.mrf.mxu2 }
  0xb3   : > { %v3191_v60 = vpop.f32.mrf.mxu3  ;;  %v3193_v61 = vpop.f32.mrf.mxu1 }
  0xb4   : > { %3823 = vst [vmem:[#allocation6_spill] sm:$0xff] %v3191_v60 }
  0xb6   : > { %v3195_v2 = vpop.f32.mrf.mxu0 }
  0xba   : > { %v3201_v7 = vpop.f32.mrf.mxu2 }
  0xbb   : > { %v3203_v8 = vpop.f32.mrf.mxu3  ;;  %v3205_v42 = vpop.f32.mrf.mxu1 }
  0xbc   : > { %3824 = vst [vmem:[#allocation7_spill] sm:$0xff] %v3203_v8 }
  0xbe   : > { %v3211_v11 = vpop.f32.mrf.mxu0  ;;  %2433 = vmatmul.msk.bf16.gmra.mxu1 %vm315_vm1, %v3177_v57 }
  0xbf   : > { %2482 = vmatmul.msk.bf16.gmra.mxu2 %vm315_vm1, %v3207_v9 }
  0xc0   : > { %2499 = vmatmul.msk.bf16.gmra.mxu3 %vm315_vm1, %v3209_v10 }
  0xc1   : > { %2548 = vmatmul.msk.bf16.gmra.mxu0 %vm315_vm1, %v3064_v62 }
  0xc2   : > { %v3221_v12 = vpop.f32.mrf.mxu2 }
  0xc3   : > { %v3223_v14 = vpop.f32.mrf.mxu3  ;;  %v3225_v15 = vpop.f32.mrf.mxu1 }
  0xc4   : > { %3826 = vst [vmem:[#allocation9_spill] sm:$0xff] %v3223_v14  ;;  %v2462_v14 = vld [vmem:[%s2972_s19 + $0x2d8] sm:$0xff] }
  0xc6   : > { %v3227_v20 = vpop.f32.mrf.mxu0 }
  0xca   : > { %v3233_v27 = vpop.f32.mrf.mxu2 }
  0xcb   : > { %v3235_v28 = vpop.f32.mrf.mxu3  ;;  %v3237_v62 = vpop.f32.mrf.mxu1 }
  0xcc   : > { %3827 = vst [vmem:[#allocation10_spill] sm:$0xff] %v3235_v28 }
  0xce   : > { %v3243_v36 = vpop.f32.mrf.mxu0  ;;  %2434 = vmatmul.msk.bf16.gmra.mxu1 %vm315_vm1, %v3209_v10 }
  0xcf   : > { %2483 = vmatmul.msk.bf16.gmra.mxu2 %vm315_vm1, %v3239_v29 }
  0xd0   : > { %2500 = vmatmul.msk.bf16.gmra.mxu3 %vm315_vm1, %v3241_v35 }
  0xd1   : > { %2549 = vmatmul.msk.bf16.gmra.mxu0 %vm315_vm1, %v2982_v17  ;;  %v3271_v17 = vpack.c.bf16 %v837_v4, %v836_v3 }
  0xd2   : > { %v3253_v37 = vpop.f32.mrf.mxu2 }
  0xd3   : > { %v3255_v38 = vpop.f32.mrf.mxu3  ;;  %v3257_v50 = vpop.f32.mrf.mxu1 }
  0xd4   : > { %3830 = vst [vmem:[#allocation13_spill] sm:$0xff] %v3255_v38  ;;  %v2461_v38 = vld [vmem:[%s2972_s19 + $0x2d0] sm:$0xff] }
  0xd5   : > { %v3289_v55 = vpack.c.bf16 %v2462_v14, %v2461_v38 }
  0xd6   : > { %v3259_v51 = vpop.f32.mrf.mxu0 }
  0xda   : > { %v3265_v5 = vpop.f32.mrf.mxu2 }
  0xdb   : > { %v3267_v6 = vpop.f32.mrf.mxu3  ;;  %v517_v21 = vpop.f32.mrf.mxu1 }
  0xdc   : > { %3831 = vst [vmem:[#allocation14_spill] sm:$0xff] %v3267_v6  ;;  %v518_v23 = vadd.f32 %v517_v21, %v3147_v46 }
  0xde   : > { %v1152_v26 = vpop.f32.mrf.mxu0  ;;  %2435 = vmatmul.msk.bf16.gmra.mxu1 %vm315_vm1, %v3241_v35  ;;  %v838_v35 = vld [vmem:[%s2972_s19 + $0xa0] sm:$0xff] }
  0xdf   : > { %2484 = vmatmul.msk.bf16.gmra.mxu2 %vm315_vm1, %v3269_v22  ;;  %v839_v22 = vld [vmem:[%s2972_s19 + $0xa8] sm:$0xff] }
  0xe0   : > { %2501 = vmatmul.msk.bf16.gmra.mxu3 %vm315_vm1, %v3271_v17 }
  0xe1   : > { %2550 = vmatmul.msk.bf16.gmra.mxu0 %vm315_vm1, %v3005_v31  ;;  %v3291_v31 = vpack.c.bf16 %v839_v22, %v838_v35  ;;  %v2463_v22 = vld [vmem:[%s2972_s19 + $0x2e0] sm:$0xff] }
  0xe2   : > { %v708_v52 = vpop.f32.mrf.mxu2 }
  0xe3   : > { %v930_v53 = vpop.f32.mrf.mxu3  ;;  %v788_v3 = vadd.f32 %v708_v52, %v518_v23  ;;  %v519_v4 = vpop.f32.mrf.mxu1 }
  0xe4   : > { %v520_v46 = vadd.f32 %v519_v4, %v3163_v49  ;;  %v841_v4 = vld [vmem:[%s2972_s19 + $0xb8] sm:$0xff] }
  0xe5   : > { %v1010_v21 = vadd.f32 %v930_v53, %v788_v3  ;;  %v2464_v53 = vld [vmem:[%s2972_s19 + $0x2e8] sm:$0xff]  ;;  %v840_v3 = vld [vmem:[%s2972_s19 + $0xb0] sm:$0xff] }
  0xe6   : > { %v1154_v6 = vpop.f32.mrf.mxu0 }
  0xe7   : > { %v3284_v28 = vadd.f32 %v1152_v26, %v1010_v21 }
  0xea   : > { %v710_v8 = vpop.f32.mrf.mxu2 }
  0xeb   : > { %v932_v60 = vpop.f32.mrf.mxu3  ;;  %v789_v29 = vadd.f32 %v710_v8, %v520_v46  ;;  %v522_v10 = vpop.f32.mrf.mxu1 }
  0xec   : > { %v523_v23 = vadd.f32 %v522_v10, %v3179_v58 }
  0xed   : > { %v1011_v49 = vadd.f32 %v932_v60, %v789_v29 }
  0xee   : > { %v1157_v52 = vpop.f32.mrf.mxu0  ;;  %2436 = vmatmul.msk.bf16.gmra.mxu1 %vm315_vm1, %v3271_v17 }
  0xef   : > { %2485 = vmatmul.msk.bf16.gmra.mxu2 %vm315_vm1, %v3289_v55  ;;  %v3300_v8 = vadd.f32 %v1154_v6, %v1011_v49 }
  0xf0   : > { %2502 = vmatmul.msk.bf16.gmra.mxu3 %vm315_vm1, %v3291_v31 }
  0xf1   : > { %3833 = vst [vmem:[#allocation16_spill] sm:$0xff] %v3300_v8  ;;  %2551 = vmatmul.msk.bf16.gmra.mxu0 %vm315_vm1, %v3026_v43  ;;  %v3311_v8 = vpack.c.bf16 %v2464_v53, %v2463_v22  ;;  %v3313_v43 = vpack.c.bf16 %v841_v4, %v840_v3  ;;  %v2465_v53 = vld [vmem:[%s2972_s19 + $0x2f0] sm:$0xff]  ;;  %v2466_v4 = vld [vmem:[%s2972_s19 + $0x2f8] sm:$0xff] }
  0xf2   : > { %v713_v58 = vpop.f32.mrf.mxu2 }
  0xf3   : > { %v935_v60 = vpop.f32.mrf.mxu3  ;;  %v790_v10 = vadd.f32 %v713_v58, %v523_v23  ;;  %v524_v14 = vpop.f32.mrf.mxu1 }
  0xf4   : > { %v525_v29 = vadd.f32 %v524_v14, %v3195_v2 }
  0xf5   : > { %v1012_v35 = vadd.f32 %v935_v60, %v790_v10 }
  0xf6   : > { %v1159_v38 = vpop.f32.mrf.mxu0 }
  0xf7   : > { %v3306_v26 = vadd.f32 %v1157_v52, %v1012_v35 }
  0xfa   : > { %v715_v46 = vpop.f32.mrf.mxu2 }
  0xfb   : > { %v937_v6 = vpop.f32.mrf.mxu3  ;;  %v791_v21 = vadd.f32 %v715_v46, %v525_v29  ;;  %v527_v49 = vpop.f32.mrf.mxu1  ;;  %v842_v46 = vld [vmem:[%s2972_s19 + $0xc0] sm:$0xff] }
  0xfc   : > { %v528_v23 = vadd.f32 %v527_v49, %v3211_v11 }
  0xfd   : > { %v1013_v2 = vadd.f32 %v937_v6, %v791_v21  ;;  %v843_v6 = vld [vmem:[%s2972_s19 + $0xc8] sm:$0xff] }
  0xfe   : > { %v1162_v58 = vpop.f32.mrf.mxu0  ;;  %2437 = vmatmul.msk.bf16.gmra.mxu1 %vm315_vm1, %v3291_v31 }
  0xff   : > { %2486 = vmatmul.msk.bf16.gmra.mxu2 %vm315_vm1, %v3311_v8  ;;  %v3322_v52 = vadd.f32 %v1159_v38, %v1013_v2 }
 0x100   : > { %2503 = vmatmul.msk.bf16.gmra.mxu3 %vm315_vm1, %v3313_v43 }
 0x101   : > { %3834 = vst [vmem:[#allocation17_spill] sm:$0xff] %v3322_v52  ;;  %2552 = vmatmul.msk.bf16.gmra.mxu0 %vm315_vm1, %v3066_v63  ;;  %v3333_v52 = vpack.c.bf16 %v2466_v4, %v2465_v53  ;;  %v3335_v63 = vpack.c.bf16 %v843_v6, %v842_v46  ;;  %v2467_v4 = vld [vmem:[%s2972_s19 + $0x300] sm:$0xff]  ;;  %v2468_v6 = vld [vmem:[%s2972_s19 + $0x308] sm:$0xff] }
 0x102   : > { %v718_v11 = vpop.f32.mrf.mxu2 }
 0x103   : > { %v940_v60 = vpop.f32.mrf.mxu3  ;;  %v792_v10 = vadd.f32 %v718_v11, %v528_v23  ;;  %v529_v14 = vpop.f32.mrf.mxu1 }
 0x104   : > { %v530_v29 = vadd.f32 %v529_v14, %v3227_v20 }
 0x105   : > { %v1014_v35 = vadd.f32 %v940_v60, %v792_v10 }
 0x106   : > { %v1164_v22 = vpop.f32.mrf.mxu0 }
 0x107   : > { %v3328_v3 = vadd.f32 %v1162_v58, %v1014_v35 }
 0x10a   : > { %v720_v21 = vpop.f32.mrf.mxu2 }
 0x10b   : > { %v942_v38 = vpop.f32.mrf.mxu3  ;;  %v793_v49 = vadd.f32 %v720_v21, %v530_v29  ;;  %v532_v2 = vpop.f32.mrf.mxu1  ;;  %v844_v21 = vld [vmem:[%s2972_s19 + $0xd0] sm:$0xff] }
 0x10c   : > { %v533_v23 = vadd.f32 %v532_v2, %v3243_v36 }
 0x10d   : > { %v1015_v20 = vadd.f32 %v942_v38, %v793_v49  ;;  %v845_v38 = vld [vmem:[%s2972_s19 + $0xd8] sm:$0xff] }
 0x10e   : > { %v1167_v11 = vpop.f32.mrf.mxu0  ;;  %2438 = vmatmul.msk.bf16.gmra.mxu1 %vm315_vm1, %v3313_v43 }
 0x10f   : > { %2487 = vmatmul.msk.bf16.gmra.mxu2 %vm315_vm1, %v3333_v52  ;;  %v3344_v58 = vadd.f32 %v1164_v22, %v1015_v20 }
 0x110   : > { %2504 = vmatmul.msk.bf16.gmra.mxu3 %vm315_vm1, %v3335_v63 }
 0x111   : > { %3835 = vst [vmem:[#allocation18_spill] sm:$0xff] %v3344_v58  ;;  %2553 = vmatmul.msk.bf16.gmra.mxu0 %vm315_vm1, %v2984_v18  ;;  %v3355_v58 = vpack.c.bf16 %v2468_v6, %v2467_v4  ;;  %v3357_v18 = vpack.c.bf16 %v845_v38, %v844_v21  ;;  %v2469_v6 = vld [vmem:[%s2972_s19 + $0x310] sm:$0xff]  ;;  %v2470_v38 = vld [vmem:[%s2972_s19 + $0x318] sm:$0xff] }
 0x112   : > { %v723_v36 = vpop.f32.mrf.mxu2 }
 0x113   : > { %v945_v60 = vpop.f32.mrf.mxu3  ;;  %v794_v10 = vadd.f32 %v723_v36, %v533_v23  ;;  %v534_v14 = vpop.f32.mrf.mxu1 }
 0x114   : > { %v535_v29 = vadd.f32 %v534_v14, %v3259_v51 }
 0x115   : > { %v1016_v35 = vadd.f32 %v945_v60, %v794_v10 }
 0x116   : > { %v1169_v53 = vpop.f32.mrf.mxu0 }
 0x117   : > { %v3350_v46 = vadd.f32 %v1167_v11, %v1016_v35 }
 0x119   : > { %3836 = vst [vmem:[#allocation19_spill] sm:$0xff] %v3350_v46  ;;  %v3377_v46 = vpack.c.bf16 %v2470_v38, %v2469_v6  ;;  %v2471_v6 = vld [vmem:[%s2972_s19 + $0x320] sm:$0xff] }
 0x11a   : > { %v725_v49 = vpop.f32.mrf.mxu2 }
 0x11b   : > { %v947_v22 = vpop.f32.mrf.mxu3  ;;  %v795_v2 = vadd.f32 %v725_v49, %v535_v29  ;;  %v537_v20 = vpop.f32.mrf.mxu1  ;;  %v846_v49 = vld [vmem:[%s2972_s19 + $0xe0] sm:$0xff] }
 0x11c   : > { %v538_v36 = vadd.f32 %v537_v20, %v3141_v39 }
 0x11d   : > { %v1017_v23 = vadd.f32 %v947_v22, %v795_v2  ;;  %v847_v22 = vld [vmem:[%s2972_s19 + $0xe8] sm:$0xff] }
 0x11e   : > { %v1172_v51 = vpop.f32.mrf.mxu0  ;;  %2439 = vmatmul.msk.bf16.gmra.mxu1 %vm315_vm1, %v3335_v63  ;;  %v3379_v39 = vpack.c.bf16 %v847_v22, %v846_v49  ;;  %v2472_v49 = vld [vmem:[%s2972_s19 + $0x328] sm:$0xff]  ;;  %v848_v22 = vld [vmem:[%s2972_s19 + $0xf0] sm:$0xff] }
 0x11f   : > { %2488 = vmatmul.msk.bf16.gmra.mxu2 %vm315_vm1, %v3355_v58  ;;  %v3365_v11 = vadd.f32 %v1169_v53, %v1017_v23 }
 0x120   : > { %2505 = vmatmul.msk.bf16.gmra.mxu3 %vm315_vm1, %v3357_v18 }
 0x121   : > { %3837 = vst [vmem:[#allocation20_spill] sm:$0xff] %v3365_v11  ;;  %2554 = vmatmul.msk.bf16.gmra.mxu0 %vm315_vm1, %v3007_v32 }
 0x122   : > { %v728_v60 = vpop.f32.mrf.mxu2 }
 0x123   : > { %v950_v10 = vpop.f32.mrf.mxu3  ;;  %v796_v14 = vadd.f32 %v728_v60, %v538_v36  ;;  %v539_v29 = vpop.f32.mrf.mxu1 }
 0x124   : > { %v540_v53 = vadd.f32 %v539_v29, %v3161_v48 }
 0x125   : > { %v1018_v35 = vadd.f32 %v950_v10, %v796_v14 }
 0x126   : > { %v1174_v4 = vpop.f32.mrf.mxu0 }
 0x127   : > { %v3371_v21 = vadd.f32 %v1172_v51, %v1018_v35 }
 0x12a   : > { %v730_v2 = vpop.f32.mrf.mxu2 }
 0x12b   : > { %v952_v23 = vpop.f32.mrf.mxu3  ;;  %v797_v11 = vadd.f32 %v730_v2, %v540_v53  ;;  %v542_v32 = vpop.f32.mrf.mxu1  ;;  %v849_v53 = vld [vmem:[%s2972_s19 + $0xf8] sm:$0xff] }
 0x12c   : > { %v543_v51 = vadd.f32 %v542_v32, %v3173_v30  ;;  %v3401_v30 = vpack.c.bf16 %v849_v53, %v848_v22  ;;  %v2474_v53 = vld [vmem:[%s2972_s19 + $0x338] sm:$0xff] }
 0x12d   : > { %v1019_v20 = vadd.f32 %v952_v23, %v797_v11 }
 0x12e   : > { %v1177_v36 = vpop.f32.mrf.mxu0  ;;  %2440 = vmatmul.msk.bf16.gmra.mxu1 %vm315_vm1, %v3357_v18 }
 0x12f   : > { %2489 = vmatmul.msk.bf16.gmra.mxu2 %vm315_vm1, %v3377_v46  ;;  %v3387_v48 = vadd.f32 %v1174_v4, %v1019_v20 }
 0x130   : > { %2506 = vmatmul.msk.bf16.gmra.mxu3 %vm315_vm1, %v3379_v39 }
 0x131   : > { %3838 = vst [vmem:[#allocation21_spill] sm:$0xff] %v3387_v48  ;;  %2555 = vmatmul.msk.bf16.gmra.mxu0 %vm315_vm1, %v3028_v44  ;;  %v3399_v48 = vpack.c.bf16 %v2472_v49, %v2471_v6  ;;  %v2473_v49 = vld [vmem:[%s2972_s19 + $0x330] sm:$0xff] }
 0x132   : > { %v733_v11 = vpop.f32.mrf.mxu2 }
 0x133   : > { %v955_v60 = vpop.f32.mrf.mxu3  ;;  %v798_v10 = vadd.f32 %v733_v11, %v543_v51  ;;  %v544_v14 = vpop.f32.mrf.mxu1 }
 0x134   : > { %v545_v4 = vadd.f32 %v544_v14, %v3193_v61 }
 0x135   : > { %v1020_v29 = vadd.f32 %v955_v60, %v798_v10 }
 0x136   : > { %v1179_v35 = vpop.f32.mrf.mxu0 }
 0x137   : > { %v3393_v38 = vadd.f32 %v1177_v36, %v1020_v29 }
 0x13a   : > { %v735_v2 = vpop.f32.mrf.mxu2 }
 0x13b   : > { %v957_v23 = vpop.f32.mrf.mxu3  ;;  %v799_v20 = vadd.f32 %v735_v2, %v545_v4  ;;  %v547_v44 = vpop.f32.mrf.mxu1  ;;  %v850_v4 = vld [vmem:[%s2972_s19 + $0x100] sm:$0xff]  ;;  %v851_v2 = vld [vmem:[%s2972_s19 + $0x108] sm:$0xff] }
 0x13c   : > { %v548_v36 = vadd.f32 %v547_v44, %v3205_v42  ;;  %v3423_v44 = vpack.c.bf16 %v2474_v53, %v2473_v49 }
 0x13d   : > { %v1021_v32 = vadd.f32 %v957_v23, %v799_v20  ;;  %v2539_v23 = vld [vmem:[%s2972_s19 + $0x220] sm:$0xff]  ;;  %v2540_v20 = vld [vmem:[%s2972_s19 + $0x228] sm:$0xff] }
 0x13e   : > { %v1182_v51 = vpop.f32.mrf.mxu0  ;;  %2441 = vmatmul.msk.bf16.gmra.mxu1 %vm315_vm1, %v3379_v39 }
 0x13f   : > { %2490 = vmatmul.msk.bf16.gmra.mxu2 %vm315_vm1, %v3399_v48  ;;  %v3409_v61 = vadd.f32 %v1179_v35, %v1021_v32 }
 0x140   : > { %2507 = vmatmul.msk.bf16.gmra.mxu3 %vm315_vm1, %v3401_v30 }
 0x141   : > { %3839 = vst [vmem:[#allocation22_spill] sm:$0xff] %v3409_v61  ;;  %2556 = vmatmul.msk.bf16.gmra.mxu0 %vm315_vm1, %v3068_v0 }
 0x142   : > { %v738_v11 = vpop.f32.mrf.mxu2 }
 0x143   : > { %v960_v60 = vpop.f32.mrf.mxu3  ;;  %v800_v10 = vadd.f32 %v738_v11, %v548_v36  ;;  %v549_v14 = vpop.f32.mrf.mxu1  ;;  %v867_v36 = vpack.c.bf16 %v851_v2, %v850_v4  ;;  %v1089_v11 = vpack.c.bf16 %v2540_v20, %v2539_v23 }
 0x144   : > { %v550_v35 = vadd.f32 %v549_v14, %v3225_v15 }
 0x145   : > { %v1022_v29 = vadd.f32 %v960_v60, %v800_v10 }
 0x146   : > { %v1184_v6 = vpop.f32.mrf.mxu0 }
 0x147   : > { %v3415_v22 = vadd.f32 %v1182_v51, %v1022_v29 }
 0x14a   : > { %v740_v32 = vpop.f32.mrf.mxu2 }
 0x14b   : > { %v962_v0 = vpop.f32.mrf.mxu3  ;;  %v801_v61 = vadd.f32 %v740_v32, %v550_v35  ;;  %v552_v42 = vpop.f32.mrf.mxu1 }
 0x14c   : > { %v553_v51 = vadd.f32 %v552_v42, %v3237_v62 }
 0x14d   : > { %v1023_v60 = vadd.f32 %v962_v0, %v801_v61 }
 0x14e   : > { %v1187_v10 = vpop.f32.mrf.mxu0  ;;  %2442 = vmatmul.msk.bf16.gmra.mxu1 %vm315_vm1, %v3401_v30 }
 0x14f   : > { %2491 = vmatmul.msk.bf16.gmra.mxu2 %vm315_vm1, %v3423_v44  ;;  %v3430_v15 = vadd.f32 %v1184_v6, %v1023_v60 }
 0x150   : > { %2508 = vmatmul.msk.bf16.gmra.mxu3 %vm315_vm1, %v867_v36 }
 0x151   : > { %2557 = vmatmul.msk.bf16.gmra.mxu0 %vm315_vm1, %v1089_v11 }
 0x152   : > { %v743_v14 = vpop.f32.mrf.mxu2 }
 0x153   : > { %v965_v29 = vpop.f32.mrf.mxu3  ;;  %v802_v49 = vadd.f32 %v743_v14, %v553_v51  ;;  %v554_v53 = vpop.f32.mrf.mxu1 }
 0x154   : > { %v555_v35 = vadd.f32 %v554_v53, %v3257_v50 }
 0x155   : > { %v1024_v61 = vadd.f32 %v965_v29, %v802_v49 }
 0x156   : > { %v1189_v4 = vpop.f32.mrf.mxu0 }
 0x157   : > { %v3434_v2 = vadd.f32 %v1187_v10, %v1024_v61 }
 0x15a   : > { %v745_v23 = vpop.f32.mrf.mxu2 }
 0x15b   : > { %v967_v20 = vpop.f32.mrf.mxu3  ;;  %v803_v32 = vadd.f32 %v745_v23, %v555_v35  ;;  %v557_v0 = vpop.f32.mrf.mxu1 }
 0x15c   : > { %v558_v50 = vadd.f32 %v557_v0, %v3157_v13 }
 0x15d   : > { %v1025_v6 = vadd.f32 %v967_v20, %v803_v32 }
 0x15e   : > { %v1192_v36 = vpop.f32.mrf.mxu0  ;;  %2591 = vmatmul.msk.bf16.vlgmr.msra.gmra.mxu1 %vm315_vm1, %v3094_v16 }
 0x15f   : > { %2608 = vmatmul.msk.bf16.vlgmr.msra.gmra.mxu2 %vm315_vm1, %v3096_v19  ;;  %v3443_v62 = vadd.f32 %v1189_v4, %v1025_v6 }
 0x160   : > { %2657 = vmatmul.msk.bf16.vlgmr.msra.gmra.mxu3 %vm315_vm1, %v3030_v45 }
 0x161   : > { %2706 = vmatmul.msk.bf16.vlgmr.msra.gmra.mxu0 %vm315_vm1, %v3109_v24 }
 0x162   : > { %v748_v42 = vpop.f32.mrf.mxu2 }
 0x163   : > { %v970_v11 = vpop.f32.mrf.mxu3  ;;  %v804_v60 = vadd.f32 %v748_v42, %v558_v50  ;;  %v559_v10 = vpop.f32.mrf.mxu1 }
 0x164   : > { %v560_v19 = vadd.f32 %v559_v10, %v3169_v54 }
 0x165   : > { %v1026_v51 = vadd.f32 %v970_v11, %v804_v60 }
 0x166   : > { %v1194_v14 = vpop.f32.mrf.mxu0 }
 0x167   : > { %v3448_v16 = vadd.f32 %v1192_v36, %v1026_v51  ;;  %v2628_v36 = vld [vmem:[%s2972_s19 + $0x160] sm:$0xff] }
 0x16a   : > { %v750_v29 = vpop.f32.mrf.mxu2 }
 0x16b   : > { %v972_v49 = vpop.f32.mrf.mxu3  ;;  %v805_v45 = vadd.f32 %v750_v29, %v560_v19  ;;  %v562_v53 = vpop.f32.mrf.mxu1 }
 0x16c   : > { %v563_v54 = vadd.f32 %v562_v53, %v3189_v59 }
 0x16d   : > { %v1027_v61 = vadd.f32 %v972_v49, %v805_v45 }
 0x16e   : > { %v1197_v4 = vpop.f32.mrf.mxu0  ;;  %2592 = vmatmul.msk.bf16.gmra.mxu1 %vm315_vm1, %v3109_v24 }
 0x16f   : > { %2609 = vmatmul.msk.bf16.gmra.mxu2 %vm315_vm1, %v3111_v25  ;;  %v3457_v13 = vadd.f32 %v1194_v14, %v1027_v61  ;;  %v2629_v25 = vld [vmem:[%s2972_s19 + $0x168] sm:$0xff] }
 0x170   : > { %2658 = vmatmul.msk.bf16.gmra.mxu3 %vm315_vm1, %v3070_v1  ;;  %v1742_v10 = vpack.c.bf16 %v2629_v25, %v2628_v36 }
 0x171   : > { %2707 = vmatmul.msk.bf16.gmra.mxu0 %vm315_vm1, %v3125_v33 }
 0x172   : > { %v753_v35 = vpop.f32.mrf.mxu2 }
 0x173   : > { %v975_v23 = vpop.f32.mrf.mxu3  ;;  %v806_v20 = vadd.f32 %v753_v35, %v563_v54  ;;  %v564_v32 = vpop.f32.mrf.mxu1  ;;  %v2631_v54 = vld [vmem:[%s2972_s19 + $0x178] sm:$0xff] }
 0x174   : > { %v565_v50 = vadd.f32 %v564_v32, %v3201_v7 }
 0x175   : > { %v1028_v0 = vadd.f32 %v975_v23, %v806_v20 }
 0x176   : > { %v1199_v6 = vpop.f32.mrf.mxu0 }
 0x177   : > { %v3462_v24 = vadd.f32 %v1197_v4, %v1028_v0 }
 0x17a   : > { %v755_v1 = vpop.f32.mrf.mxu2 }
 0x17b   : > { %v977_v42 = vpop.f32.mrf.mxu3  ;;  %v807_v11 = vadd.f32 %v755_v1, %v565_v50  ;;  %v567_v60 = vpop.f32.mrf.mxu1 }
 0x17c   : > { %v568_v7 = vadd.f32 %v567_v60, %v3221_v12 }
 0x17d   : > { %v1029_v51 = vadd.f32 %v977_v42, %v807_v11 }
 0x17e   : > { %v1202_v59 = vpop.f32.mrf.mxu0  ;;  %2593 = vmatmul.msk.bf16.gmra.mxu1 %vm315_vm1, %v3125_v33  ;;  %v2630_v33 = vld [vmem:[%s2972_s19 + $0x170] sm:$0xff] }
 0x17f   : > { %2610 = vmatmul.msk.bf16.gmra.mxu2 %vm315_vm1, %v3127_v34  ;;  %v3472_v14 = vadd.f32 %v1199_v6, %v1029_v51  ;;  %v1743_v0 = vpack.c.bf16 %v2631_v54, %v2630_v33  ;;  %v2633_v51 = vld [vmem:[%s2972_s19 + $0x188] sm:$0xff] }
 0x180   : > { %2659 = vmatmul.msk.bf16.gmra.mxu3 %vm315_vm1, %v1742_v10 }
 0x181   : > { %2708 = vmatmul.msk.bf16.gmra.mxu0 %vm315_vm1, %v3143_v40 }
 0x182   : > { %v758_v19 = vpop.f32.mrf.mxu2 }
 0x183   : > { %v980_v29 = vpop.f32.mrf.mxu3  ;;  %v808_v49 = vadd.f32 %v758_v19, %v568_v7  ;;  %v569_v45 = vpop.f32.mrf.mxu1 }
 0x184   : > { %v570_v34 = vadd.f32 %v569_v45, %v3233_v27 }
 0x185   : > { %v1030_v53 = vadd.f32 %v980_v29, %v808_v49 }
 0x186   : > { %v1204_v61 = vpop.f32.mrf.mxu0 }
 0x187   : > { %v3477_v4 = vadd.f32 %v1202_v59, %v1030_v53 }
 0x18a   : > { %v760_v35 = vpop.f32.mrf.mxu2 }
 0x18b   : > { %v982_v23 = vpop.f32.mrf.mxu3  ;;  %v809_v20 = vadd.f32 %v760_v35, %v570_v34  ;;  %v572_v32 = vpop.f32.mrf.mxu1 }
 0x18c   : > { %v573_v27 = vadd.f32 %v572_v32, %v3253_v37  ;;  %v2635_v32 = vld [vmem:[%s2972_s19 + $0x198] sm:$0xff] }
 0x18d   : > { %v1031_v6 = vadd.f32 %v982_v23, %v809_v20 }
 0x18e   : > { %v1207_v12 = vpop.f32.mrf.mxu0  ;;  %2594 = vmatmul.msk.bf16.gmra.mxu1 %vm315_vm1, %v3143_v40  ;;  %v2632_v40 = vld [vmem:[%s2972_s19 + $0x180] sm:$0xff] }
 0x18f   : > { %2611 = vmatmul.msk.bf16.gmra.mxu2 %vm315_vm1, %v3145_v41  ;;  %v3487_v36 = vadd.f32 %v1204_v61, %v1031_v6  ;;  %v1744_v49 = vpack.c.bf16 %v2633_v51, %v2632_v40  ;;  %v3843_v40 = vld [vmem:[#allocation6_spill] sm:$0xff] }
 0x190   : > { %2660 = vmatmul.msk.bf16.gmra.mxu3 %vm315_vm1, %v1743_v0 }
 0x191   : > { %2709 = vmatmul.msk.bf16.gmra.mxu0 %vm315_vm1, %v3175_v56 }
 0x192   : > { %v763_v25 = vpop.f32.mrf.mxu2 }
 0x193   : > { %v985_v50 = vpop.f32.mrf.mxu3  ;;  %v810_v1 = vadd.f32 %v763_v25, %v573_v27  ;;  %v574_v42 = vpop.f32.mrf.mxu1 }
 0x194   : > { %v575_v41 = vadd.f32 %v574_v42, %v3265_v5  ;;  %v3841_v42 = vld [vmem:[#allocation8_spill] sm:$0xff] }
 0x195   : > { %v1032_v11 = vadd.f32 %v985_v50, %v810_v1 }
 0x196   : > { %v1209_v60 = vpop.f32.mrf.mxu0 }
 0x197   : > { %v3492_v10 = vadd.f32 %v1207_v12, %v1032_v11 }
 0x19a   : > { %v765_v59 = vpop.f32.mrf.mxu2 }
 0x19b   : > { %v987_v7 = vpop.f32.mrf.mxu3  ;;  %v811_v19 = vadd.f32 %v765_v59, %v575_v41  ;;  %v577_v29 = vpop.f32.mrf.mxu1 }
 0x19c   : > { %v578_v5 = vadd.f32 %v577_v29, %v3159_v47 }
 0x19d   : > { %v1033_v45 = vadd.f32 %v987_v7, %v811_v19 }
 0x19e   : > { %v1212_v37 = vpop.f32.mrf.mxu0  ;;  %2595 = vmatmul.msk.bf16.gmra.mxu1 %vm315_vm1, %v3175_v56  ;;  %v2634_v56 = vld [vmem:[%s2972_s19 + $0x190] sm:$0xff] }
 0x19f   : > { %2612 = vmatmul.msk.bf16.gmra.mxu2 %vm315_vm1, %v3177_v57  ;;  %v3502_v53 = vadd.f32 %v1209_v60, %v1033_v45  ;;  %v3840_v57 = vld [vmem:[#allocation5_spill] sm:$0xff]  ;;  %v1745_v50 = vpack.c.bf16 %v2635_v32, %v2634_v56  ;;  %v3842_v60 = vld [vmem:[#allocation11_spill] sm:$0xff] }
 0x1a0   : > { %2661 = vmatmul.msk.bf16.gmra.mxu3 %vm315_vm1, %v1744_v49 }
 0x1a1   : > { %2710 = vmatmul.msk.bf16.gmra.mxu0 %vm315_vm1, %v3207_v9 }
 0x1a2   : > { %v768_v61 = vpop.f32.mrf.mxu2 }
 0x1a3   : > { %v990_v33 = vpop.f32.mrf.mxu3  ;;  %v812_v54 = vadd.f32 %v768_v61, %v578_v5  ;;  %v579_v34 = vpop.f32.mrf.mxu1  ;;  %v3844_v5 = vld [vmem:[#allocation7_spill] sm:$0xff] }
 0x1a4   : > { %v580_v0 = vadd.f32 %v579_v34, %v3840_v57  ;;  %v3845_v57 = vld [vmem:[#allocation12_spill] sm:$0xff] }
 0x1a5   : > { %v1034_v35 = vadd.f32 %v990_v33, %v812_v54 }
 0x1a6   : > { %v1214_v23 = vpop.f32.mrf.mxu0 }
 0x1a7   : > { %v3507_v20 = vadd.f32 %v1212_v37, %v1034_v35  ;;  %v2637_v37 = vld [vmem:[%s2972_s19 + $0x1a8] sm:$0xff] }
 0x1aa   : > { %v770_v6 = vpop.f32.mrf.mxu2 }
 0x1ab   : > { %v992_v12 = vpop.f32.mrf.mxu3  ;;  %v813_v27 = vadd.f32 %v770_v6, %v580_v0  ;;  %v582_v25 = vpop.f32.mrf.mxu1  ;;  %v3846_v6 = vld [vmem:[#allocation15_spill] sm:$0xff] }
 0x1ac   : > { %v583_v51 = vadd.f32 %v582_v25, %v3843_v40 }
 0x1ad   : > { %v1035_v1 = vadd.f32 %v992_v12, %v813_v27  ;;  %v3847_v12 = vld [vmem:[#allocation9_spill] sm:$0xff] }
 0x1ae   : > { %v1217_v47 = vpop.f32.mrf.mxu0  ;;  %2596 = vmatmul.msk.bf16.gmra.mxu1 %vm315_vm1, %v3207_v9  ;;  %v2636_v9 = vld [vmem:[%s2972_s19 + $0x1a0] sm:$0xff] }
 0x1af   : > { %2613 = vmatmul.msk.bf16.gmra.mxu2 %vm315_vm1, %v3841_v42  ;;  %v3517_v11 = vadd.f32 %v1214_v23, %v1035_v1  ;;  %v1746_v23 = vpack.c.bf16 %v2637_v37, %v2636_v9 }
 0x1b0   : > { %2662 = vmatmul.msk.bf16.gmra.mxu3 %vm315_vm1, %v1745_v50 }
 0x1b1   : > { %2711 = vmatmul.msk.bf16.gmra.mxu0 %vm315_vm1, %v3842_v60 }
 0x1b2   : > { %v773_v41 = vpop.f32.mrf.mxu2 }
 0x1b3   : > { %v995_v59 = vpop.f32.mrf.mxu3  ;;  %v814_v7 = vadd.f32 %v773_v41, %v583_v51  ;;  %v584_v19 = vpop.f32.mrf.mxu1  ;;  %v2639_v41 = vld [vmem:[%s2972_s19 + $0x1b8] sm:$0xff] }
 0x1b4   : > { %v585_v61 = vadd.f32 %v584_v19, %v3844_v5 }
 0x1b5   : > { %v1036_v29 = vadd.f32 %v995_v59, %v814_v7  ;;  %v3848_v59 = vld [vmem:[#allocation10_spill] sm:$0xff] }
 0x1b6   : > { %v1219_v49 = vpop.f32.mrf.mxu0 }
 0x1b7   : > { %v3522_v45 = vadd.f32 %v1217_v47, %v1036_v29 }
 0x1ba   : > { %v775_v33 = vpop.f32.mrf.mxu2 }
 0x1bb   : > { %v997_v54 = vpop.f32.mrf.mxu3  ;;  %v815_v34 = vadd.f32 %v775_v33, %v585_v61  ;;  %v587_v35 = vpop.f32.mrf.mxu1 }
 0x1bc   : > { %v588_v27 = vadd.f32 %v587_v35, %v3847_v12 }
 0x1bd   : > { %v1037_v56 = vadd.f32 %v997_v54, %v815_v34  ;;  %v3849_v54 = vld [vmem:[#allocation13_spill] sm:$0xff] }
 0x1be   : > { %v1222_v32 = vpop.f32.mrf.mxu0  ;;  %2597 = vmatmul.msk.bf16.gmra.mxu1 %vm315_vm1, %v3842_v60  ;;  %v2638_v60 = vld [vmem:[%s2972_s19 + $0x1b0] sm:$0xff] }
 0x1bf   : > { %2614 = vmatmul.msk.bf16.gmra.mxu2 %vm315_vm1, %v3845_v57  ;;  %v3532_v0 = vadd.f32 %v1219_v49, %v1037_v56  ;;  %v1747_v37 = vpack.c.bf16 %v2639_v41, %v2638_v60 }
 0x1c0   : > { %2663 = vmatmul.msk.bf16.gmra.mxu3 %vm315_vm1, %v1746_v23 }
 0x1c1   : > { %2712 = vmatmul.msk.bf16.gmra.mxu0 %vm315_vm1, %v3846_v6 }
 0x1c2   : > { %v778_v25 = vpop.f32.mrf.mxu2 }
 0x1c3   : > { %v1000_v50 = vpop.f32.mrf.mxu3  ;;  %v816_v1 = vadd.f32 %v778_v25, %v588_v27  ;;  %v589_v47 = vpop.f32.mrf.mxu1  ;;  %v2641_v25 = vld [vmem:[%s2972_s19 + $0x1c8] sm:$0xff] }
 0x1c4   : > { %v590_v7 = vadd.f32 %v589_v47, %v3848_v59 }
 0x1c5   : > { %v1038_v42 = vadd.f32 %v1000_v50, %v816_v1 }
 0x1c6   : > { %v1224_v40 = vpop.f32.mrf.mxu0 }
 0x1c7   : > { %v3537_v51 = vadd.f32 %v1222_v32, %v1038_v42 }
 0x1ca   : > { %v780_v19 = vpop.f32.mrf.mxu2 }
 0x1cb   : > { %v1002_v29 = vpop.f32.mrf.mxu3  ;;  %v817_v49 = vadd.f32 %v780_v19, %v590_v7  ;;  %v592_v9 = vpop.f32.mrf.mxu1 }
 0x1cc   : > { %v593_v34 = vadd.f32 %v592_v9, %v3849_v54  ;;  %v2642_v54 = vld [vmem:[%s2972_s19 + $0x1d0] sm:$0xff] }
 0x1cd   : > { %v1039_v5 = vadd.f32 %v1002_v29, %v817_v49 }
 0x1ce   : > { %v1227_v61 = vpop.f32.mrf.mxu0  ;;  %2598 = vmatmul.msk.bf16.gmra.mxu1 %vm315_vm1, %v3846_v6  ;;  %v2640_v6 = vld [vmem:[%s2972_s19 + $0x1c0] sm:$0xff] }
 0x1cf   : > { %2615 = vmatmul.msk.bf16.gmra.mxu2 %vm315_vm1, %v3271_v17  ;;  %v3547_v33 = vadd.f32 %v1224_v40, %v1039_v5  ;;  %v3850_v17 = vld [vmem:[#allocation14_spill] sm:$0xff]  ;;  %v1748_v60 = vpack.c.bf16 %v2641_v25, %v2640_v6 }
 0x1d0   : > { %2664 = vmatmul.msk.bf16.gmra.mxu3 %vm315_vm1, %v1747_v37 }
 0x1d1   : > { %2713 = vmatmul.msk.bf16.gmra.mxu0 %vm315_vm1, %v3289_v55 }
 0x1d2   : > { %v783_v35 = vpop.f32.mrf.mxu2 }
 0x1d3   : > { %v1005_v23 = vpop.f32.mrf.mxu3  ;;  %v818_v56 = vadd.f32 %v783_v35, %v593_v34  ;;  %v594_v32 = vpop.f32.mrf.mxu1  ;;  %v2643_v34 = vld [vmem:[%s2972_s19 + $0x1d8] sm:$0xff] }
 0x1d4   : > { %v595_v50 = vadd.f32 %v594_v32, %v3850_v17  ;;  %v1749_v25 = vpack.c.bf16 %v2643_v34, %v2642_v54 }
 0x1d5   : > { %v1040_v57 = vadd.f32 %v1005_v23, %v818_v56 }
 0x1d6   : > { %v1229_v12 = vpop.f32.mrf.mxu0 }
 0x1d7   : > { %v3552_v27 = vadd.f32 %v1227_v61, %v1040_v57 }
 0x1da   : > { %v785_v1 = vpop.f32.mrf.mxu2 }
 0x1db   : > { %v1007_v47 = vpop.f32.mrf.mxu3  ;;  %v819_v42 = vadd.f32 %v785_v1, %v595_v50  ;;  %v1374_v40 = vpop.f32.mrf.mxu1 }
 0x1dc   : > { %v1454_v19 = vadd.f32 %v1374_v40, %v3284_v28  ;;  %v3851_v28 = vld [vmem:[#allocation16_spill] sm:$0xff] }
 0x1dd   : > { %v1041_v41 = vadd.f32 %v1007_v47, %v819_v42 }
 0x1de   : > { %v2040_v59 = vpop.f32.mrf.mxu0  ;;  %2599 = vmatmul.msk.bf16.gmra.mxu1 %vm315_vm1, %v3289_v55 }
 0x1df   : > { %2616 = vmatmul.msk.bf16.gmra.mxu2 %vm315_vm1, %v3291_v31  ;;  %v3562_v7 = vadd.f32 %v1229_v12, %v1041_v41  ;;  %v3571_v31 = vld [vmem:[%s3812_s2] ss:$0 sm:$0xff] }
 0x1e0   : > { %2665 = vmatmul.msk.bf16.gmra.mxu3 %vm315_vm1, %v1748_v60 }
 0x1e1   : > { %2714 = vmatmul.msk.bf16.gmra.mxu0 %vm315_vm1, %v3311_v8 }
 0x1e2   : > { %v1596_v29 = vpop.f32.mrf.mxu2 }
 0x1e3   : > { %v1818_v49 = vpop.f32.mrf.mxu3  ;;  %v1676_v9 = vadd.f32 %v1596_v29, %v1454_v19  ;;  %v1376_v37 = vpop.f32.mrf.mxu1 }
 0x1e4   : > { %v1455_v23 = vadd.f32 %v1376_v37, %v3851_v28 }
 0x1e5   : > { %v1898_v55 = vadd.f32 %v1818_v49, %v1676_v9  ;;  %v2644_v49 = vld [vmem:[%s2972_s19 + $0x1e0] sm:$0xff]  ;;  %v2645_v9 = vld [vmem:[%s2972_s19 + $0x1e8] sm:$0xff] }
 0x1e6   : > { %v2042_v5 = vpop.f32.mrf.mxu0  ;;  %v1750_v28 = vpack.c.bf16 %v2645_v9, %v2644_v49 }
 0x1e7   : > { %v2120_v61 = vadd.f32 %v2040_v59, %v1898_v55  ;;  %v3852_v55 = vld [vmem:[#allocation17_spill] sm:$0xff] }
 0x1e9   : > { %v2156_v35 = vadd.f32 %v3571_v31, %v2120_v61 }
 0x1ea   : > { %v1598_v56 = vpop.f32.mrf.mxu2 }
 0x1eb   : > { %v1820_v32 = vpop.f32.mrf.mxu3  ;;  %v2188_v57 = vmax.f32 %v2156_v35, 0.0  ;;  %v1677_v12 = vadd.f32 %v1598_v56, %v1455_v23  ;;  %v1379_v6 = vpop.f32.mrf.mxu1 }
 0x1ec   : > { %v1456_v42 = vadd.f32 %v1379_v6, %v3306_v26 }
 0x1ed   : > { %2221 = vst.msk [vmem:[%s3579_s9] sm:$0xff] %vm2220_vm2, %v2188_v57  ;;  %v1899_v17 = vadd.f32 %v1820_v32, %v1677_v12 }
 0x1ee   : > { %v2045_v50 = vpop.f32.mrf.mxu0  ;;  %2600 = vmatmul.msk.bf16.gmra.mxu1 %vm315_vm1, %v3311_v8 }
 0x1ef   : > { %v2121_v1 = vadd.f32 %v2042_v5, %v1899_v17  ;;  %2617 = vmatmul.msk.bf16.gmra.mxu2 %vm315_vm1, %v3313_v43 }
 0x1f0   : > { %2666 = vmatmul.msk.bf16.gmra.mxu3 %vm315_vm1, %v1749_v25 }
 0x1f1   : > { %2715 = vmatmul.msk.bf16.gmra.mxu0 %vm315_vm1, %v3333_v52  ;;  %v2157_v47 = vadd.f32 %v3571_v31, %v2121_v1 }
 0x1f2   : > { %v1601_v40 = vpop.f32.mrf.mxu2 }
 0x1f3   : > { %v1823_v60 = vpop.f32.mrf.mxu3  ;;  %v2189_v41 = vmax.f32 %v2157_v47, 0.0  ;;  %v1678_v59 = vadd.f32 %v1601_v40, %v1456_v42  ;;  %v1381_v8 = vpop.f32.mrf.mxu1  ;;  %v2646_v42 = vld [vmem:[%s2972_s19 + $0x1f0] sm:$0xff]  ;;  %v2647_v40 = vld [vmem:[%s2972_s19 + $0x1f8] sm:$0xff] }
 0x1f4   : > { %v1457_v5 = vadd.f32 %v1381_v8, %v3852_v55  ;;  %v1751_v49 = vpack.c.bf16 %v2647_v40, %v2646_v42 }
 0x1f5   : > { %2222 = vst.msk [vmem:[%s3579_s9 + $0x8] sm:$0xff] %vm2220_vm2, %v2189_v41  ;;  %v1900_v19 = vadd.f32 %v1823_v60, %v1678_v59  ;;  %v3853_v41 = vld [vmem:[#allocation18_spill] sm:$0xff] }
 0x1f6   : > { %v2047_v29 = vpop.f32.mrf.mxu0 }
 0x1f7   : > { %v2122_v43 = vadd.f32 %v2045_v50, %v1900_v19 }
 0x1f9   : > { %v2158_v37 = vadd.f32 %v3571_v31, %v2122_v43 }
 0x1fa   : > { %v1603_v61 = vpop.f32.mrf.mxu2 }
 0x1fb   : > { %v1825_v54 = vpop.f32.mrf.mxu3  ;;  %v2190_v26 = vmax.f32 %v2158_v37, 0.0  ;;  %v1679_v34 = vadd.f32 %v1603_v61, %v1457_v5  ;;  %v1384_v35 = vpop.f32.mrf.mxu1  ;;  %v3854_v61 = vld [vmem:[#allocation19_spill] sm:$0xff] }
 0x1fc   : > { %v1458_v12 = vadd.f32 %v1384_v35, %v3328_v3 }
 0x1fd   : > { %2223 = vst.msk [vmem:[%s3579_s9 + $0x10] sm:$0xff] %vm2220_vm2, %v2190_v26  ;;  %v1901_v23 = vadd.f32 %v1825_v54, %v1679_v34 }
 0x1fe   : > { %v2050_v56 = vpop.f32.mrf.mxu0  ;;  %2601 = vmatmul.msk.bf16.gmra.mxu1 %vm315_vm1, %v3333_v52 }
 0x1ff   : > { %v2123_v32 = vadd.f32 %v2047_v29, %v1901_v23  ;;  %2618 = vmatmul.msk.bf16.gmra.mxu2 %vm315_vm1, %v3335_v63 }
 0x200   : > { %2667 = vmatmul.msk.bf16.gmra.mxu3 %vm315_vm1, %v1750_v28 }
 0x201   : > { %2716 = vmatmul.msk.bf16.gmra.mxu0 %vm315_vm1, %v3355_v58  ;;  %v2159_v57 = vadd.f32 %v3571_v31, %v2123_v32  ;;  %v2648_v32 = vld [vmem:[%s2972_s19 + $0x200] sm:$0xff] }
 0x202   : > { %v1606_v6 = vpop.f32.mrf.mxu2 }
 0x203   : > { %v1828_v25 = vpop.f32.mrf.mxu3  ;;  %v2191_v17 = vmax.f32 %v2159_v57, 0.0  ;;  %v1680_v50 = vadd.f32 %v1606_v6, %v1458_v12  ;;  %v1386_v52 = vpop.f32.mrf.mxu1  ;;  %v2649_v57 = vld [vmem:[%s2972_s19 + $0x208] sm:$0xff]  ;;  %v3855_v6 = vld [vmem:[#allocation20_spill] sm:$0xff] }
 0x204   : > { %v1459_v59 = vadd.f32 %v1386_v52, %v3853_v41 }
 0x205   : > { %2224 = vst.msk [vmem:[%s3579_s9 + $0x18] sm:$0xff] %vm2220_vm2, %v2191_v17  ;;  %v1902_v1 = vadd.f32 %v1828_v25, %v1680_v50 }
 0x206   : > { %v2052_v47 = vpop.f32.mrf.mxu0 }
 0x207   : > { %v2124_v63 = vadd.f32 %v2050_v56, %v1902_v1 }
 0x209   : > { %v2160_v60 = vadd.f32 %v3571_v31, %v2124_v63  ;;  %v1752_v63 = vpack.c.bf16 %v2649_v57, %v2648_v32 }
 0x20a   : > { %v1608_v8 = vpop.f32.mrf.mxu2 }
 0x20b   : > { %v1830_v19 = vpop.f32.mrf.mxu3  ;;  %v2192_v3 = vmax.f32 %v2160_v60, 0.0  ;;  %v1681_v29 = vadd.f32 %v1608_v8, %v1459_v59  ;;  %v1389_v43 = vpop.f32.mrf.mxu1 }
 0x20c   : > { %v1460_v54 = vadd.f32 %v1389_v43, %v3854_v61 }
 0x20d   : > { %2225 = vst.msk [vmem:[%s3579_s9 + $0x20] sm:$0xff] %vm2220_vm2, %v2192_v3  ;;  %v1903_v9 = vadd.f32 %v1830_v19, %v1681_v29 }
 0x20e   : > { %v2055_v37 = vpop.f32.mrf.mxu0  ;;  %2602 = vmatmul.msk.bf16.gmra.mxu1 %vm315_vm1, %v3355_v58 }
 0x20f   : > { %v2125_v55 = vadd.f32 %v2052_v47, %v1903_v9  ;;  %2619 = vmatmul.msk.bf16.gmra.mxu2 %vm315_vm1, %v3357_v18  ;;  %v2650_v9 = vld [vmem:[%s2972_s19 + $0x210] sm:$0xff] }
 0x210   : > { %2668 = vmatmul.msk.bf16.gmra.mxu3 %vm315_vm1, %v1751_v49 }
 0x211   : > { %2717 = vmatmul.msk.bf16.gmra.mxu0 %vm315_vm1, %v3377_v46  ;;  %v2161_v5 = vadd.f32 %v3571_v31, %v2125_v55 }
 0x212   : > { %v1611_v26 = vpop.f32.mrf.mxu2 }
 0x213   : > { %v1833_v34 = vpop.f32.mrf.mxu3  ;;  %v2193_v35 = vmax.f32 %v2161_v5, 0.0  ;;  %v1682_v28 = vadd.f32 %v1611_v26, %v1460_v54  ;;  %v1391_v58 = vpop.f32.mrf.mxu1  ;;  %v3856_v5 = vld [vmem:[#allocation21_spill] sm:$0xff] }
 0x214   : > { %v1461_v25 = vadd.f32 %v1391_v58, %v3855_v6 }
 0x215   : > { %2226 = vst.msk [vmem:[%s3579_s9 + $0x28] sm:$0xff] %vm2220_vm2, %v2193_v35  ;;  %v1904_v23 = vadd.f32 %v1833_v34, %v1682_v28 }
 0x216   : > { %v2057_v56 = vpop.f32.mrf.mxu0 }
 0x217   : > { %v2126_v18 = vadd.f32 %v2055_v37, %v1904_v23  ;;  %v2651_v37 = vld [vmem:[%s2972_s19 + $0x218] sm:$0xff] }
 0x218   : > { %v1753_v28 = vpack.c.bf16 %v2651_v37, %v2650_v9 }
 0x219   : > { %v2162_v12 = vadd.f32 %v3571_v31, %v2126_v18 }
 0x21a   : > { %v1613_v17 = vpop.f32.mrf.mxu2 }
 0x21b   : > { %v1835_v50 = vpop.f32.mrf.mxu3  ;;  %v2194_v52 = vmax.f32 %v2162_v12, 0.0  ;;  %v1683_v1 = vadd.f32 %v1613_v17, %v1461_v25  ;;  %v1394_v47 = vpop.f32.mrf.mxu1 }
 0x21c   : > { %v1462_v59 = vadd.f32 %v1394_v47, %v3371_v21  ;;  %v1515_v47 = vld [vmem:[%s2972_s19 + $0x108] sm:$0xff] }
 0x21d   : > { %2227 = vst.msk [vmem:[%s3579_s9 + $0x30] sm:$0xff] %vm2220_vm2, %v2194_v52  ;;  %v1905_v42 = vadd.f32 %v1835_v50, %v1683_v1  ;;  %v2586_v52 = vld [vmem:[%s2972_s19 + $0x330] sm:$0xff]  ;;  %v1514_v1 = vld [vmem:[%s2972_s19 + $0x100] sm:$0xff] }
 0x21e   : > { %v2060_v40 = vpop.f32.mrf.mxu0  ;;  %2603 = vmatmul.msk.bf16.gmra.mxu1 %vm315_vm1, %v3377_v46 }
 0x21f   : > { %v2127_v60 = vadd.f32 %v2057_v56, %v1905_v42  ;;  %2620 = vmatmul.msk.bf16.gmra.mxu2 %vm315_vm1, %v3379_v39  ;;  %v2653_v42 = vld [vmem:[%s2972_s19 + $0x228] sm:$0xff] }
 0x220   : > { %2669 = vmatmul.msk.bf16.gmra.mxu3 %vm315_vm1, %v1752_v63  ;;  %v2652_v63 = vld [vmem:[%s2972_s19 + $0x220] sm:$0xff] }
 0x221   : > { %2718 = vmatmul.msk.bf16.gmra.mxu0 %vm315_vm1, %v3399_v48  ;;  %v2163_v41 = vadd.f32 %v3571_v31, %v2127_v60 }
 0x222   : > { %v1616_v8 = vpop.f32.mrf.mxu2 }
 0x223   : > { %v1838_v19 = vpop.f32.mrf.mxu3  ;;  %v2195_v3 = vmax.f32 %v2163_v41, 0.0  ;;  %v1684_v29 = vadd.f32 %v1616_v8, %v1462_v59  ;;  %v1396_v46 = vpop.f32.mrf.mxu1  ;;  %v2701_v41 = vld [vmem:[%s2972_s19 + $0x340] sm:$0xff]  ;;  %v2702_v59 = vld [vmem:[%s2972_s19 + $0x348] sm:$0xff] }
 0x224   : > { %v1463_v61 = vadd.f32 %v1396_v46, %v3856_v5  ;;  %v1976_v9 = vpack.c.bf16 %v2702_v59, %v2701_v41 }
 0x225   : > { %2228 = vst.msk [vmem:[%s3579_s9 + $0x38] sm:$0xff] %vm2220_vm2, %v2195_v3  ;;  %v1906_v43 = vadd.f32 %v1838_v19, %v1684_v29 }
 0x226   : > { %v2062_v49 = vpop.f32.mrf.mxu0 }
 0x227   : > { %v2128_v39 = vadd.f32 %v2060_v40, %v1906_v43  ;;  %v3857_v40 = vld [vmem:[#allocation22_spill] sm:$0xff] }
 0x229   : > { %v2164_v55 = vadd.f32 %v3571_v31, %v2128_v39  ;;  %v1754_v39 = vpack.c.bf16 %v2653_v42, %v2652_v63 }
 0x22a   : > { %v1618_v54 = vpop.f32.mrf.mxu2 }
 0x22b   : > { %v1840_v26 = vpop.f32.mrf.mxu3  ;;  %v2196_v21 = vmax.f32 %v2164_v55, 0.0  ;;  %v1685_v34 = vadd.f32 %v1618_v54, %v1463_v61  ;;  %v1399_v35 = vpop.f32.mrf.mxu1 }
 0x22c   : > { %v1464_v32 = vadd.f32 %v1399_v35, %v3393_v38 }
 0x22d   : > { %2229 = vst.msk [vmem:[%s3579_s9 + $0x40] sm:$0xff] %vm2220_vm2, %v2196_v21  ;;  %v1907_v58 = vadd.f32 %v1840_v26, %v1685_v34 }
 0x22e   : > { %v2065_v23 = vpop.f32.mrf.mxu0  ;;  %2604 = vmatmul.msk.bf16.gmra.mxu1 %vm315_vm1, %v3399_v48 }
 0x22f   : > { %v2129_v56 = vadd.f32 %v2062_v49, %v1907_v58  ;;  %2621 = vmatmul.msk.bf16.gmra.mxu2 %vm315_vm1, %v3401_v30  ;;  %v1532_v49 = vpack.c.bf16 %v1515_v47, %v1514_v1 }
 0x230   : > { %2670 = vmatmul.msk.bf16.gmra.mxu3 %vm315_vm1, %v1753_v28 }
 0x231   : > { %2719 = vmatmul.msk.bf16.gmra.mxu0 %vm315_vm1, %v3423_v44  ;;  %v2165_v18 = vadd.f32 %v3571_v31, %v2129_v56  ;;  %v2587_v44 = vld [vmem:[%s2972_s19 + $0x338] sm:$0xff] }
 0x232   : > { %v1621_v48 = vpop.f32.mrf.mxu2  ;;  %v1310_v3 = vpack.c.bf16 %v2587_v44, %v2586_v52 }
 0x233   : > { %v1843_v57 = vpop.f32.mrf.mxu3  ;;  %v2197_v12 = vmax.f32 %v2165_v18, 0.0  ;;  %v1686_v6 = vadd.f32 %v1621_v48, %v1464_v32  ;;  %v1401_v30 = vpop.f32.mrf.mxu1  ;;  %v1516_v18 = vld [vmem:[%s2972_s19 + $0x110] sm:$0xff]  ;;  %v1517_v32 = vld [vmem:[%s2972_s19 + $0x118] sm:$0xff] }
 0x234   : > { %v1465_v60 = vadd.f32 %v1401_v30, %v3857_v40  ;;  %v2654_v48 = vld [vmem:[%s2972_s19 + $0x230] sm:$0xff]  ;;  %v2704_v30 = vld [vmem:[%s2972_s19 + $0x358] sm:$0xff]  ;;  %v1533_v1 = vpack.c.bf16 %v1517_v32, %v1516_v18 }
 0x235   : > { %2230 = vst.msk [vmem:[%s3579_s9 + $0x48] sm:$0xff] %vm2220_vm2, %v2197_v12  ;;  %v1908_v25 = vadd.f32 %v1843_v57, %v1686_v6  ;;  %v2655_v57 = vld [vmem:[%s2972_s19 + $0x238] sm:$0xff]  ;;  %v2703_v6 = vld [vmem:[%s2972_s19 + $0x350] sm:$0xff]  ;;  %s2266_s19 = scalar_lea.hbm %s3813_s3, %s2727_s10 }
 0x236   : > { %v2067_v17 = vpop.f32.mrf.mxu0  ;;  %v1755_v47 = vpack.c.bf16 %v2655_v57, %v2654_v48  ;;  %v1977_v63 = vpack.c.bf16 %v2704_v30, %v2703_v6  ;;  %s2269_s23 = sshll.u32 %s2266_s19, 4  ;;  %s2270_s23 = int_to_ptr.hbm [resolvable:$true] %s2269_s23 }
 0x237   : > { %v2130_v50 = vadd.f32 %v2065_v23, %v1908_v25  ;;  %s2804_s26 = sshra.s32 %s2270_s23, 4  ;;  %s2805_s26 = int_to_ptr.hbm [resolvable:$true] %s2804_s26 }
 0x238   : > { %s2806_s27 = scalar_lea.hbm %s2805_s26, 256  ;;  %p2811_p1 = scmp.lt.s32.totalorder %s2805_s26, %s3813_s3 }
 0x239   : > { %v2166_v38 = vadd.f32 %v3571_v31, %v2130_v50  ;;  %p2807_p12 = scmp.ne.s32.totalorder %s2805_s26, %s2806_s27  ;;  %p2812_p2 = scmp.lt.s32.totalorder %s2810_s30, %s2806_s27 }
 0x23a   : > { %v1623_v8 = vpop.f32.mrf.mxu2 }
 0x23b   : > { %v1845_v19 = vpop.f32.mrf.mxu3  ;;  %v2198_v29 = vmax.f32 %v2166_v38, 0.0  ;;  %v1687_v46 = vadd.f32 %v1623_v8, %v1465_v60  ;;  %v1404_v43 = vpop.f32.mrf.mxu1  ;;  %p2808_p13 = pnand %p2807_p12, %p2932_p4  ;;  %p2813_p3 = por %p2812_p2, %p2811_p1 }
 0x23c   : > { %v1466_v54 = vadd.f32 %v1404_v43, %v3415_v22 }
 0x23d   : > { %2231 = vst.msk [vmem:[%s3579_s9 + $0x50] sm:$0xff] %vm2220_vm2, %v2198_v29  ;;  %v1909_v37 = vadd.f32 %v1845_v19, %v1687_v46  ;;  %p2809_p0 = pneg %p2808_p13 }
 0x23e   : > { %v2070_v55 = vpop.f32.mrf.mxu0  ;;  %2605 = vmatmul.msk.bf16.gmra.mxu1 %vm315_vm1, %v1310_v3 }
 0x23f   : > { %v2131_v5 = vadd.f32 %v2067_v17, %v1909_v37  ;;  %2622 = vmatmul.msk.bf16.gmra.mxu2 %vm315_vm1, %v1532_v49  ;;  %p2814_p5 = pnand %p2813_p3, %p2809_p0 }
 0x240   : > { %2671 = vmatmul.msk.bf16.gmra.mxu3 %vm315_vm1, %v1754_v39 }
 0x241   : > { %2720 = vmatmul.msk.bf16.gmra.mxu0 %vm315_vm1, %v1976_v9  ;;  %v2167_v61 = vadd.f32 %v3571_v31, %v2131_v5 }
 0x242   : > { %v1626_v26 = vpop.f32.mrf.mxu2 }
 0x243   : > { %v1848_v21 = vpop.f32.mrf.mxu3  ;;  %v2199_v34 = vmax.f32 %v2167_v61, 0.0  ;;  %v1688_v35 = vadd.f32 %v1626_v26, %v1466_v54  ;;  %v1406_v28 = vpop.f32.mrf.mxu1 }
 0x244   : > { %v1467_v22 = vadd.f32 %v1406_v28, %v3430_v15 }
 0x245   : > { %2232 = vst.msk [vmem:[%s3579_s9 + $0x58] sm:$0xff] %vm2220_vm2, %v2199_v34  ;;  %v1910_v58 = vadd.f32 %v1848_v21, %v1688_v35 }
 0x246   : > { %v2072_v23 = vpop.f32.mrf.mxu0 }
 0x247   : > { %v2132_v56 = vadd.f32 %v2070_v55, %v1910_v58 }
 0x249   : > { %v2168_v12 = vadd.f32 %v3571_v31, %v2132_v56 }
 0x24a   : > { %v1628_v25 = vpop.f32.mrf.mxu2 }
 0x24b   : > { %v1850_v17 = vpop.f32.mrf.mxu3  ;;  %v2200_v50 = vmax.f32 %v2168_v12, 0.0  ;;  %v1689_v52 = vadd.f32 %v1628_v25, %v1467_v22  ;;  %v1409_v44 = vpop.f32.mrf.mxu1 }
 0x24c   : > { %v1468_v60 = vadd.f32 %v1409_v44, %v3434_v2 }
 0x24d   : > { %2233 = vst.msk [vmem:[%s3579_s9 + $0x60] sm:$0xff] %vm2220_vm2, %v2200_v50  ;;  %v1911_v42 = vadd.f32 %v1850_v17, %v1689_v52 }
 0x24e   : > { %v2075_v38 = vpop.f32.mrf.mxu0  ;;  %2606 = vmatmul.msk.bf16.gmra.mxu1 %vm315_vm1, %v1976_v9 }
 0x24f   : > { %v2133_v40 = vadd.f32 %v2072_v23, %v1911_v42  ;;  %2623 = vmatmul.msk.bf16.gmra.mxu2 %vm315_vm1, %v1533_v1 }
 0x250   : > { %2672 = vmatmul.msk.bf16.gmra.mxu3 %vm315_vm1, %v1755_v47 }
 0x251   : > { %2721 = vmatmul.msk.bf16.gmra.mxu0 %vm315_vm1, %v1977_v63  ;;  %v2169_v15 = vadd.f32 %v3571_v31, %v2133_v40 }
 0x252   : > { %v1631_v41 = vpop.f32.mrf.mxu2 }
 0x253   : > { %v1853_v59 = vpop.f32.mrf.mxu3  ;;  %v2201_v8 = vmax.f32 %v2169_v15, 0.0  ;;  %v1690_v19 = vadd.f32 %v1631_v41, %v1468_v60  ;;  %v1411_v3 = vpop.f32.mrf.mxu1 }
 0x254   : > { %v1469_v39 = vadd.f32 %v1411_v3, %v3443_v62 }
 0x255   : > { %2234 = vst.msk [vmem:[%s3579_s9 + $0x68] sm:$0xff] %vm2220_vm2, %v2201_v8  ;;  %v1912_v29 = vadd.f32 %v1853_v59, %v1690_v19 }
 0x256   : > { %v2077_v46 = vpop.f32.mrf.mxu0 }
 0x257   : > { %v2134_v43 = vadd.f32 %v2075_v38, %v1912_v29 }
 0x259   : > { %v2170_v49 = vadd.f32 %v3571_v31, %v2134_v43 }
 0x25a   : > { %v1633_v9 = vpop.f32.mrf.mxu2 }
 0x25b   : > { %v1855_v37 = vpop.f32.mrf.mxu3  ;;  %v2202_v55 = vmax.f32 %v2170_v49, 0.0  ;;  %v1691_v2 = vadd.f32 %v1633_v9, %v1469_v39  ;;  %v1414_v5 = vpop.f32.mrf.mxu1 }
 0x25c   : > { %v1470_v34 = vadd.f32 %v1414_v5, %v3448_v16 }
 0x25d   : > { %2235 = vst.msk [vmem:[%s3579_s9 + $0x70] sm:$0xff] %vm2220_vm2, %v2202_v55  ;;  %v1913_v61 = vadd.f32 %v1855_v37, %v1691_v2 }
 0x25e   : > { %v2080_v54 = vpop.f32.mrf.mxu0 }
 0x25f   : > { %v2135_v26 = vadd.f32 %v2077_v46, %v1913_v61 }
 0x261   : > { %v2171_v21 = vadd.f32 %v3571_v31, %v2135_v26 }
 0x262   : > { %v1636_v35 = vpop.f32.mrf.mxu2 }
 0x263   : > { %v1858_v28 = vpop.f32.mrf.mxu3  ;;  %v2203_v58 = vmax.f32 %v2171_v21, 0.0  ;;  %v1692_v62 = vadd.f32 %v1636_v35, %v1470_v34  ;;  %v1416_v23 = vpop.f32.mrf.mxu1 }
 0x264   : > { %v1471_v57 = vadd.f32 %v1416_v23, %v3457_v13 }
 0x265   : > { %2236 = vst.msk [vmem:[%s3579_s9 + $0x78] sm:$0xff] %vm2220_vm2, %v2203_v58  ;;  %v1914_v56 = vadd.f32 %v1858_v28, %v1692_v62 }
 0x266   : > { %v2082_v18 = vpop.f32.mrf.mxu0 }
 0x267   : > { %v2136_v32 = vadd.f32 %v2080_v54, %v1914_v56 }
 0x269   : > { %v2172_v48 = vadd.f32 %v3571_v31, %v2136_v32 }
 0x26a   : > { %v1638_v12 = vpop.f32.mrf.mxu2 }
 0x26b   : > { %v1860_v22 = vpop.f32.mrf.mxu3  ;;  %v2204_v6 = vmax.f32 %v2172_v48, 0.0  ;;  %v1693_v16 = vadd.f32 %v1638_v12, %v1471_v57  ;;  %v1419_v30 = vpop.f32.mrf.mxu1 }
 0x26c   : > { %v1472_v44 = vadd.f32 %v1419_v30, %v3462_v24 }
 0x26d   : > { %2237 = vst.msk [vmem:[%s3579_s9 + $0x80] sm:$0xff] %vm2220_vm2, %v2204_v6  ;;  %v1915_v25 = vadd.f32 %v1860_v22, %v1693_v16 }
 0x26e   : > { %v2085_v17 = vpop.f32.mrf.mxu0 }
 0x26f   : > { %v2137_v50 = vadd.f32 %v2082_v18, %v1915_v25 }
 0x271   : > { %v2173_v52 = vadd.f32 %v3571_v31, %v2137_v50 }
 0x272   : > { %v1641_v1 = vpop.f32.mrf.mxu2 }
 0x273   : > { %v1863_v47 = vpop.f32.mrf.mxu3  ;;  %v2205_v63 = vmax.f32 %v2173_v52, 0.0  ;;  %v1694_v13 = vadd.f32 %v1641_v1, %v1472_v44  ;;  %v1421_v42 = vpop.f32.mrf.mxu1 }
 0x274   : > { %v1473_v41 = vadd.f32 %v1421_v42, %v3472_v14 }
 0x275   : > { %2238 = vst.msk [vmem:[%s3579_s9 + $0x88] sm:$0xff] %vm2220_vm2, %v2205_v63  ;;  %v1916_v38 = vadd.f32 %v1863_v47, %v1694_v13 }
 0x276   : > { %v2087_v40 = vpop.f32.mrf.mxu0 }
 0x277   : > { %v2138_v15 = vadd.f32 %v2085_v17, %v1916_v38 }
 0x279   : > { %v2174_v60 = vadd.f32 %v3571_v31, %v2138_v15 }
 0x27a   : > { %v1643_v59 = vpop.f32.mrf.mxu2 }
 0x27b   : > { %v1865_v8 = vpop.f32.mrf.mxu3  ;;  %v2206_v19 = vmax.f32 %v2174_v60, 0.0  ;;  %v1695_v24 = vadd.f32 %v1643_v59, %v1473_v41  ;;  %v1424_v3 = vpop.f32.mrf.mxu1 }
 0x27c   : > { %v1474_v39 = vadd.f32 %v1424_v3, %v3477_v4 }
 0x27d   : > { %2239 = vst.msk [vmem:[%s3579_s9 + $0x90] sm:$0xff] %vm2220_vm2, %v2206_v19  ;;  %v1917_v29 = vadd.f32 %v1865_v8, %v1695_v24 }
 0x27e   : > { %v2090_v46 = vpop.f32.mrf.mxu0 }
 0x27f   : > { %v2139_v43 = vadd.f32 %v2087_v40, %v1917_v29 }
 0x281   : > { %v2175_v49 = vadd.f32 %v3571_v31, %v2139_v43 }
 0x282   : > { %v1646_v9 = vpop.f32.mrf.mxu2 }
 0x283   : > { %v1868_v37 = vpop.f32.mrf.mxu3  ;;  %v2207_v55 = vmax.f32 %v2175_v49, 0.0  ;;  %v1696_v14 = vadd.f32 %v1646_v9, %v1474_v39  ;;  %v1426_v2 = vpop.f32.mrf.mxu1 }
 0x284   : > { %v1475_v21 = vadd.f32 %v1426_v2, %v3487_v36 }
 0x285   : > { %2240 = vst.msk [vmem:[%s3579_s9 + $0x98] sm:$0xff] %vm2220_vm2, %v2207_v55  ;;  %v1918_v5 = vadd.f32 %v1868_v37, %v1696_v14 }
 0x286   : > { %v2092_v61 = vpop.f32.mrf.mxu0 }
 0x287   : > { %v2140_v54 = vadd.f32 %v2090_v46, %v1918_v5 }
 0x289   : > { %v2176_v26 = vadd.f32 %v3571_v31, %v2140_v54 }
 0x28a   : > { %v1648_v34 = vpop.f32.mrf.mxu2 }
 0x28b   : > { %v1870_v35 = vpop.f32.mrf.mxu3  ;;  %v2208_v28 = vmax.f32 %v2176_v26, 0.0  ;;  %v1697_v4 = vadd.f32 %v1648_v34, %v1475_v21  ;;  %v1429_v58 = vpop.f32.mrf.mxu1 }
 0x28c   : > { %v1476_v32 = vadd.f32 %v1429_v58, %v3492_v10 }
 0x28d   : > { %2241 = vst.msk [vmem:[%s3579_s9 + $0xa0] sm:$0xff] %vm2220_vm2, %v2208_v28  ;;  %v1919_v62 = vadd.f32 %v1870_v35, %v1697_v4 }
 0x28e   : > { %v2095_v23 = vpop.f32.mrf.mxu0 }
 0x28f   : > { %v2141_v56 = vadd.f32 %v2092_v61, %v1919_v62 }
 0x291   : > { %v2177_v18 = vadd.f32 %v3571_v31, %v2141_v56 }
 0x292   : > { %v1651_v48 = vpop.f32.mrf.mxu2 }
 0x293   : > { %v1873_v57 = vpop.f32.mrf.mxu3  ;;  %v2209_v12 = vmax.f32 %v2177_v18, 0.0  ;;  %v1698_v36 = vadd.f32 %v1651_v48, %v1476_v32  ;;  %v1431_v22 = vpop.f32.mrf.mxu1 }
 0x294   : > { %v1477_v17 = vadd.f32 %v1431_v22, %v3502_v53 }
 0x295   : > { %2242 = vst.msk [vmem:[%s3579_s9 + $0xa8] sm:$0xff] %vm2220_vm2, %v2209_v12  ;;  %v1920_v6 = vadd.f32 %v1873_v57, %v1698_v36 }
 0x296   : > { %v2097_v16 = vpop.f32.mrf.mxu0 }
 0x297   : > { %v2142_v30 = vadd.f32 %v2095_v23, %v1920_v6 }
 0x299   : > { %v2178_v25 = vadd.f32 %v3571_v31, %v2142_v30 }
 0x29a   : > { %v1653_v50 = vpop.f32.mrf.mxu2 }
 0x29b   : > { %v1875_v52 = vpop.f32.mrf.mxu3  ;;  %v2210_v44 = vmax.f32 %v2178_v25, 0.0  ;;  %v1699_v10 = vadd.f32 %v1653_v50, %v1477_v17  ;;  %v1434_v1 = vpop.f32.mrf.mxu1 }
 0x29c   : > { %v1478_v38 = vadd.f32 %v1434_v1, %v3507_v20 }
 0x29d   : > { %2243 = vst.msk [vmem:[%s3579_s9 + $0xb0] sm:$0xff] %vm2220_vm2, %v2210_v44  ;;  %v1921_v47 = vadd.f32 %v1875_v52, %v1699_v10 }
 0x29e   : > { %v2100_v63 = vpop.f32.mrf.mxu0 }
 0x29f   : > { %v2143_v13 = vadd.f32 %v2097_v16, %v1921_v47 }
 0x2a1   : > { %v2179_v42 = vadd.f32 %v3571_v31, %v2143_v13 }
 0x2a2   : > { %v1656_v40 = vpop.f32.mrf.mxu2 }
 0x2a3   : > { %v1878_v15 = vpop.f32.mrf.mxu3  ;;  %v2211_v60 = vmax.f32 %v2179_v42, 0.0  ;;  %v1700_v53 = vadd.f32 %v1656_v40, %v1478_v38  ;;  %v1436_v41 = vpop.f32.mrf.mxu1 }
 0x2a4   : > { %v1479_v3 = vadd.f32 %v1436_v41, %v3517_v11 }
 0x2a5   : > { %2244 = vst.msk [vmem:[%s3579_s9 + $0xb8] sm:$0xff] %vm2220_vm2, %v2211_v60  ;;  %v1922_v59 = vadd.f32 %v1878_v15, %v1700_v53 }
 0x2a6   : > { %v2102_v8 = vpop.f32.mrf.mxu0 }
 0x2a7   : > { %v2144_v19 = vadd.f32 %v2100_v63, %v1922_v59 }
 0x2a9   : > { %v2180_v24 = vadd.f32 %v3571_v31, %v2144_v19 }
 0x2aa   : > { %v1658_v29 = vpop.f32.mrf.mxu2 }
 0x2ab   : > { %v1880_v46 = vpop.f32.mrf.mxu3  ;;  %v2212_v43 = vmax.f32 %v2180_v24, 0.0  ;;  %v1701_v20 = vadd.f32 %v1658_v29, %v1479_v3  ;;  %v1439_v49 = vpop.f32.mrf.mxu1 }
 0x2ac   : > { %v1480_v14 = vadd.f32 %v1439_v49, %v3522_v45 }
 0x2ad   : > { %2245 = vst.msk [vmem:[%s3579_s9 + $0xc0] sm:$0xff] %vm2220_vm2, %v2212_v43  ;;  %v1923_v39 = vadd.f32 %v1880_v46, %v1701_v20 }
 0x2ae   : > { %v2105_v9 = vpop.f32.mrf.mxu0 }
 0x2af   : > { %v2145_v37 = vadd.f32 %v2102_v8, %v1923_v39 }
 0x2b1   : > { %v2181_v55 = vadd.f32 %v3571_v31, %v2145_v37 }
 0x2b2   : > { %v1661_v2 = vpop.f32.mrf.mxu2 }
 0x2b3   : > { %v1883_v5 = vpop.f32.mrf.mxu3  ;;  %v2213_v61 = vmax.f32 %v2181_v55, 0.0  ;;  %v1702_v11 = vadd.f32 %v1661_v2, %v1480_v14  ;;  %v1441_v54 = vpop.f32.mrf.mxu1 }
 0x2b4   : > { %v1481_v28 = vadd.f32 %v1441_v54, %v3532_v0 }
 0x2b5   : > { %2246 = vst.msk [vmem:[%s3579_s9 + $0xc8] sm:$0xff] %vm2220_vm2, %v2213_v61  ;;  %v1924_v26 = vadd.f32 %v1883_v5, %v1702_v11 }
 0x2b6   : > { %v2107_v21 = vpop.f32.mrf.mxu0 }
 0x2b7   : > { %v2146_v34 = vadd.f32 %v2105_v9, %v1924_v26 }
 0x2b9   : > { %v2182_v35 = vadd.f32 %v3571_v31, %v2146_v34 }
 0x2ba   : > { %v1663_v4 = vpop.f32.mrf.mxu2 }
 0x2bb   : > { %v1885_v58 = vpop.f32.mrf.mxu3  ;;  %v2214_v62 = vmax.f32 %v2182_v35, 0.0  ;;  %v1703_v45 = vadd.f32 %v1663_v4, %v1481_v28  ;;  %v1444_v23 = vpop.f32.mrf.mxu1 }
 0x2bc   : > { %v1482_v57 = vadd.f32 %v1444_v23, %v3537_v51 }
 0x2bd   : > { %2247 = vst.msk [vmem:[%s3579_s9 + $0xd0] sm:$0xff] %vm2220_vm2, %v2214_v62  ;;  %v1925_v56 = vadd.f32 %v1885_v58, %v1703_v45 }
 0x2be   : > { %v2110_v32 = vpop.f32.mrf.mxu0 }
 0x2bf   : > { %v2147_v18 = vadd.f32 %v2107_v21, %v1925_v56 }
 0x2c1   : > { %v2183_v48 = vadd.f32 %v3571_v31, %v2147_v18 }
 0x2c2   : > { %v1666_v12 = vpop.f32.mrf.mxu2 }
 0x2c3   : > { %v1888_v36 = vpop.f32.mrf.mxu3  ;;  %v2215_v22 = vmax.f32 %v2183_v48, 0.0  ;;  %v1704_v0 = vadd.f32 %v1666_v12, %v1482_v57  ;;  %v1446_v6 = vpop.f32.mrf.mxu1 }
 0x2c4   : > { %v1483_v17 = vadd.f32 %v1446_v6, %v3547_v33 }
 0x2c5   : > { %2248 = vst.msk [vmem:[%s3579_s9 + $0xd8] sm:$0xff] %vm2220_vm2, %v2215_v22  ;;  %v1926_v16 = vadd.f32 %v1888_v36, %v1704_v0 }
 0x2c6   : > { %v2112_v50 = vpop.f32.mrf.mxu0 }
 0x2c7   : > { %v2148_v30 = vadd.f32 %v2110_v32, %v1926_v16 }
 0x2c9   : > { %v2184_v25 = vadd.f32 %v3571_v31, %v2148_v30 }
 0x2ca   : > { %v1668_v52 = vpop.f32.mrf.mxu2 }
 0x2cb   : > { %v1890_v44 = vpop.f32.mrf.mxu3  ;;  %v2216_v10 = vmax.f32 %v2184_v25, 0.0  ;;  %v1705_v51 = vadd.f32 %v1668_v52, %v1483_v17  ;;  %v1449_v1 = vpop.f32.mrf.mxu1 }
 0x2cc   : > { %v1484_v42 = vadd.f32 %v1449_v1, %v3552_v27 }
 0x2cd   : > { %2249 = vst.msk [vmem:[%s3579_s9 + $0xe0] sm:$0xff] %vm2220_vm2, %v2216_v10  ;;  %v1927_v47 = vadd.f32 %v1890_v44, %v1705_v51 }
 0x2ce   : > { %v2115_v60 = vpop.f32.mrf.mxu0 }
 0x2cf   : > { %v2149_v63 = vadd.f32 %v2112_v50, %v1927_v47 }
 0x2d1   : > { %v2185_v13 = vadd.f32 %v3571_v31, %v2149_v63 }
 0x2d2   : > { %v1671_v38 = vpop.f32.mrf.mxu2 }
 0x2d3   : > { %v1893_v40 = vpop.f32.mrf.mxu3  ;;  %v2217_v33 = vmax.f32 %v2185_v13, 0.0  ;;  %v1706_v15 = vadd.f32 %v1671_v38, %v1484_v42  ;;  %v1451_v41 = vpop.f32.mrf.mxu1 }
 0x2d4   : > { %v1485_v19 = vadd.f32 %v1451_v41, %v3562_v7 }
 0x2d5   : > { %2250 = vst.msk [vmem:[%s3579_s9 + $0xe8] sm:$0xff] %vm2220_vm2, %v2217_v33  ;;  %v1928_v53 = vadd.f32 %v1893_v40, %v1706_v15 }
 0x2d6   : > { %v2117_v43 = vpop.f32.mrf.mxu0 }
 0x2d7   : > { %v2150_v59 = vadd.f32 %v2115_v60, %v1928_v53 }
 0x2d9   : > { %v2186_v8 = vadd.f32 %v3571_v31, %v2150_v59 }
 0x2da   : > { %v1673_v24 = vpop.f32.mrf.mxu2 }
 0x2db   : > { %v2218_v27 = vmax.f32 %v2186_v8, 0.0  ;;  %v1707_v3 = vadd.f32 %v1673_v24, %v1485_v19  ;;  %v1895_v29 = vpop.f32.mrf.mxu3 }
 0x2dd   : > { %2251 = vst.msk [vmem:[%s3579_s9 + $0xf0] sm:$0xff] %vm2220_vm2, %v2218_v27  ;;  %v1929_v46 = vadd.f32 %v1895_v29, %v1707_v3 }
 0x2df   : > { %v2151_v20 = vadd.f32 %v2117_v43, %v1929_v46 }
 0x2e1   : > { %v2187_v7 = vadd.f32 %v3571_v31, %v2151_v20 }
 0x2e3   : > { %v2219_v49 = vmax.f32 %v2187_v7, 0.0 }
 0x2e5   : > { %2252 = vst.msk [vmem:[%s3579_s9 + $0xf8] sm:$0xff] %vm2220_vm2, %v2219_v49 }
 0x2e6   : > { %2817 = shalt.err (!%p2814_p5)
}
 0x2e7   : > { %s2870_s5 = smov 128   ;;  %s2871_s7 = smov 8  }
 0x2e8   : > { %2732 = dma.vmem_to_hbm [thread:$0]  (%p2932_p4), %s2268_s21, 4096, %s2270_s23, %s2254_s15, %s2870_s5, %s2870_s5, %s2871_s7  }
 0x2e9 PF: > { %p2738_p6 = scmp.ge.s32.totalorder %s2868_s17, 2  ;;  %s2284_s8 = sand.u32 1, %s2848_s12  }
 0x2ea   : > { %s2285_s9 = scalar_lea.sflag [#allocation3], %s2284_s8 }
 0x2eb   : > { %p2735_p7 = pnand %p2738_p6, %p2939_p8 }
 0x2ed   : > { %p2736_p9 = pneg %p2735_p7 }
 0x2ef   : > { %2843 = dma.done.wait (%p2736_p9), %s2285_s9, 4096  }
 0x2f0   : > { %2845 = vsyncadd (%p2736_p9), %s2285_s9, 4294963200  ;;  %s16_s17 = sadd.s32 1, %s2868_s17   ;;  %s3858_s12 = smov %s2852_s13 }
 0x2f1   : > { %p13_p10 = scmp.ge.s32.totalorder %s16_s17, 4   ;;  %s3859_s13 = smov %s2856_s14 }
 0x2f2   : > { %s3860_s14 = smov %s2945_s25  ;;  %s3861_s15 = smov %s2864_s16 }
 0x2f3   : > { %s3862_s16 = smov %s3864_s20  ;;  %15 = sbr.rel (!%p13_p10) target bundleno = 4 (0x4), region = 83 }
 0x2f8   :  { %2291 = vsyncpa [#allocation3], 1 }
 0x2f9   :  { %2293 = vsyncpa [#allocation3 + $0x1], 1 }

</bundles_post_ra>
